<compile_context>
chip_gen: v6e
topology: v6e:2x2x1
jax: 0.10.0
libtpu: 0.0.40
codegen_flags: <defaults>
</compile_context>

<pallas_src>
import functools

import numpy as np
import jax
import jax.numpy as jnp
from jax.experimental import pallas as pl
from jax.experimental.pallas import tpu as pltpu

GROUPS = 32
REDUCTION = 16
# (planes, num_blocks, stride) per stage of se_resnext50_32x4d
STAGES = [(64, 3, 1), (128, 4, 2), (256, 6, 2), (512, 3, 2)]

_ROW_TILE_CAP = 512   # row (sublane) tile cap; safe for v7x 32 MiB scoped VMEM


def _round_up(x, m):
    return ((x + m - 1) // m) * m


def _pick_row_tile(n, cap=_ROW_TILE_CAP):
    """Row tile: full extent when small (weights streamed once), else a divisor in
    [cap/2, cap] (no padding), else `cap` with pad-to-tile.  Never collapses to 8/32."""
    n8 = _round_up(n, 8)
    if n8 <= cap:
        return n8
    for c in range(cap, cap // 2 - 1, -8):
        if n8 % c == 0:
            return c
    return cap


def _pick_cdim_tile(n, cap):
    """K / N tile for 128-multiple dims."""
    for c in (1024, 512, 256, 128):
        if c <= cap and n % c == 0:
            return c
    return min(n, cap)


# ----------------------------------------------------------------------------
# Pallas kernels
# ----------------------------------------------------------------------------
def _mm_bn_kernel(a_ref, b_ref, o_ref, sum_ref, sq_ref, acc_ref):
    """Tiled matmul (bf16 in, f32 acc) + per-row-block channel sum / sum-sq epilogue."""
    @pl.when(pl.program_id(2) == 0)
    def _():
        acc_ref[...] = jnp.zeros_like(acc_ref)

    acc_ref[...] += jnp.dot(a_ref[...], b_ref[...],
                            preferred_element_type=jnp.float32)

    @pl.when(pl.program_id(2) == pl.num_programs(2) - 1)
    def _():
        y = acc_ref[...]
        o_ref[...] = y.astype(o_ref.dtype)
        sum_ref[...] = jnp.sum(y, axis=0, keepdims=True)
        sq_ref[...] = jnp.sum(y * y, axis=0, keepdims=True)


def _mm_bn_fused_kernel(a_ref, s_ref, c_ref, b_ref, o_ref, sum_ref, sq_ref, acc_ref,
                        *, rows, tm, mask_rows):
    """Matmul with the previous BN affine + ReLU fused on the A operand (prologue)
    and channel sum / sum-sq stats fused in the epilogue.  Pad rows (>= rows) are
    masked to keep the stats exact."""
    @pl.when(pl.program_id(2) == 0)
    def _():
        acc_ref[...] = jnp.zeros_like(acc_ref)

    a = a_ref[...].astype(jnp.float32) * s_ref[...] + c_ref[...]
    a = jnp.maximum(a, 0.0)
    if mask_rows:
        rid = pl.program_id(0) * tm + jax.lax.broadcasted_iota(jnp.int32, (tm, 1), 0)
        a = jnp.where(rid < rows, a, 0.0)
    acc_ref[...] += jnp.dot(a.astype(jnp.bfloat16), b_ref[...],
                            preferred_element_type=jnp.float32)

    @pl.when(pl.program_id(2) == pl.num_programs(2) - 1)
    def _():
        y = acc_ref[...]
        o_ref[...] = y.astype(o_ref.dtype)
        sum_ref[...] = jnp.sum(y, axis=0, keepdims=True)
        sq_ref[...] = jnp.sum(y * y, axis=0, keepdims=True)


def _gmm_bn_kernel(a_ref, w_ref, o_ref, sum_ref, sq_ref):
    """Grouped conv supergroup matmul (kernel positions folded into K) + stats."""
    y = jnp.dot(a_ref[...], w_ref[...], preferred_element_type=jnp.float32)
    o_ref[...] = y.astype(o_ref.dtype)
    sum_ref[...] = jnp.sum(y, axis=0, keepdims=True)
    sq_ref[...] = jnp.sum(y * y, axis=0, keepdims=True)


def _scale_bias_act_kernel(x_ref, s_ref, b_ref, o_ref, *, relu):
    y = x_ref[...].astype(jnp.float32) * s_ref[...] + b_ref[...]
    if relu:
        y = jnp.maximum(y, 0.0)
    o_ref[...] = y.astype(o_ref.dtype)


def _pool_bn_kernel(x_ref, s_ref, c_ref, o_ref, *, inv_hw):
    """Spatial-mean with a deferred BN affine applied to the mean (exact)."""
    t = pl.program_id(1)

    @pl.when(t == 0)
    def _():
        o_ref[...] = jnp.zeros_like(o_ref)

    o_ref[...] += jnp.sum(x_ref[...].astype(jnp.float32), axis=0, keepdims=True)

    @pl.when(t == pl.num_programs(1) - 1)
    def _():
        o_ref[...] = o_ref[...] * inv_hw * s_ref[...] + c_ref[...]


def _se_residual_kernel(x_ref, sx_ref, cx_ref, r_ref, sr_ref, cr_ref, g_ref, o_ref):
    """relu(bn(x) * sigmoid(gate) + bn(residual)) with both BN affines fused in."""
    x = x_ref[...].astype(jnp.float32) * sx_ref[...] + cx_ref[...]
    r = r_ref[...].astype(jnp.float32) * sr_ref[...] + cr_ref[...]
    gate = jax.nn.sigmoid(g_ref[...])
    o_ref[...] = jnp.maximum(x * gate + r, 0.0).astype(o_ref.dtype)


def _head_kernel(x_ref, w_ref, b_ref, o_ref):
    y = jnp.dot(x_ref[...], w_ref[...],
                preferred_element_type=jnp.float32) + b_ref[...]
    o_ref[...] = jax.nn.sigmoid(y)


# ----------------------------------------------------------------------------
# Pallas-call wrappers
# ----------------------------------------------------------------------------
def _matmul_bn(a2d, w2d, true_m, prologue=None):
    """a2d:[R,K] bf16 @ w2d:[K,Cout] bf16 with fused channel sum/sum-sq.

    prologue = (scale, bias): relu(a*scale+bias) applied to the A operand inside the
    kernel (with pad-row masking), fusing the previous conv's BN+ReLU."""
    R, K = a2d.shape
    Cout = w2d.shape[1]
    tm = _pick_row_tile(R)
    Rp = _round_up(R, tm)
    tk = _pick_cdim_tile(K, 1024)
    tn = _pick_cdim_tile(Cout, 512)
    a = a2d if Rp == R else jnp.pad(a2d, ((0, Rp - R), (0, 0)))
    ni, nj, nk = Rp // tm, Cout // tn, K // tk

    out_shape = (jax.ShapeDtypeStruct((Rp, Cout), jnp.bfloat16),
                 jax.ShapeDtypeStruct((ni, 1, Cout), jnp.float32),
                 jax.ShapeDtypeStruct((ni, 1, Cout), jnp.float32))
    out_specs = (pl.BlockSpec((tm, tn), lambda i, j, k: (i, j)),
                 pl.BlockSpec((None, 1, tn), lambda i, j, k: (i, 0, j)),
                 pl.BlockSpec((None, 1, tn), lambda i, j, k: (i, 0, j)))
    scratch = [pltpu.VMEM((tm, tn), jnp.float32)]

    if prologue is None:
        kern = _mm_bn_kernel
        in_specs = [pl.BlockSpec((tm, tk), lambda i, j, k: (i, k)),
                    pl.BlockSpec((tk, tn), lambda i, j, k: (k, j))]
        args = (a, w2d)
    else:
        scale, bias = prologue
        kern = functools.partial(_mm_bn_fused_kernel, rows=true_m, tm=tm,
                                 mask_rows=bool(Rp > true_m))
        in_specs = [pl.BlockSpec((tm, tk), lambda i, j, k: (i, k)),
                    pl.BlockSpec((1, tk), lambda i, j, k: (0, k)),
                    pl.BlockSpec((1, tk), lambda i, j, k: (0, k)),
                    pl.BlockSpec((tk, tn), lambda i, j, k: (k, j))]
        args = (a, scale.reshape(1, K).astype(jnp.float32),
                bias.reshape(1, K).astype(jnp.float32), w2d)

    y, s3, q3 = pl.pallas_call(
        kern,
        out_shape=out_shape,
        grid_spec=pltpu.PrefetchScalarGridSpec(
            num_scalar_prefetch=0,
            grid=(ni, nj, nk),
            in_specs=in_specs,
            out_specs=out_specs,
            scratch_shapes=scratch),
        compiler_params=pltpu.CompilerParams(
            dimension_semantics=("parallel", "parallel", "arbitrary")),
    )(*args)
    sums = jnp.sum(s3[:, 0, :], axis=0)
    sqs = jnp.sum(q3[:, 0, :], axis=0)
    return y, sums, sqs


def _grouped_mm_bn(a2d, wb, true_m):
    """Grouped 3x3 conv as one long-K matmul per 128-lane supergroup.

    a2d: [R, S*9*128] patches ordered (supergroup, kernel-pos, channel).
    wb:  [S, 9*128, 128] packed block-diagonal bf16 weights."""
    del true_m  # pad rows of the raw patches are zero -> stats stay exact
    R = a2d.shape[0]
    S, kkK, _ = wb.shape
    width = S * 128
    tm = _pick_row_tile(R)
    Rp = _round_up(R, tm)
    a = a2d if Rp == R else jnp.pad(a2d, ((0, Rp - R), (0, 0)))
    ni = Rp // tm

    y, s3, q3 = pl.pallas_call(
        _gmm_bn_kernel,
        out_shape=(jax.ShapeDtypeStruct((Rp, width), jnp.bfloat16),
                   jax.ShapeDtypeStruct((ni, 1, width), jnp.float32),
                   jax.ShapeDtypeStruct((ni, 1, width), jnp.float32)),
        grid_spec=pltpu.PrefetchScalarGridSpec(
            num_scalar_prefetch=0,
            grid=(ni, S),
            in_specs=[pl.BlockSpec((tm, kkK), lambda i, s: (i, s)),
                      pl.BlockSpec((None, kkK, 128), lambda i, s: (s, 0, 0))],
            out_specs=(pl.BlockSpec((tm, 128), lambda i, s: (i, s)),
                       pl.BlockSpec((None, 1, 128), lambda i, s: (i, 0, s)),
                       pl.BlockSpec((None, 1, 128), lambda i, s: (i, 0, s)))),
        compiler_params=pltpu.CompilerParams(
            dimension_semantics=("parallel", "parallel")),
    )(a, wb)
    sums = jnp.sum(s3[:, 0, :], axis=0)
    sqs = jnp.sum(q3[:, 0, :], axis=0)
    return y, sums, sqs


def scale_bias_act(x2d, scale, bias, relu=True):
    """y = x * scale + bias (per-channel), optional ReLU.  x2d: [R, C] -> bf16."""
    R, C = x2d.shape
    tm = _pick_row_tile(R)
    Rp = _round_up(R, tm)
    x = x2d if Rp == R else jnp.pad(x2d, ((0, Rp - R), (0, 0)))
    s = scale.reshape(1, C).astype(jnp.float32)
    b = bias.reshape(1, C).astype(jnp.float32)
    y = pl.pallas_call(
        functools.partial(_scale_bias_act_kernel, relu=relu),
        out_shape=jax.ShapeDtypeStruct((Rp, C), jnp.bfloat16),
        grid=(Rp // tm,),
        in_specs=[
            pl.BlockSpec((tm, C), lambda i: (i, 0)),
            pl.BlockSpec((1, C), lambda i: (0, 0)),
            pl.BlockSpec((1, C), lambda i: (0, 0)),
        ],
        out_specs=pl.BlockSpec((tm, C), lambda i: (i, 0)),
        compiler_params=pltpu.CompilerParams(dimension_semantics=("parallel",)),
    )(x, s, b)
    return y[:R] if Rp > R else y


def spatial_mean_bn(x3, scale, bias):
    """Per-image mean over HW of (x*scale+bias).  x3: [N, HW, C] -> [N, C] f32."""
    N, HW, C = x3.shape
    thw = _pick_row_tile(HW)
    HWp = _round_up(HW, thw)
    if HWp > HW:
        x3 = jnp.pad(x3, ((0, 0), (0, HWp - HW), (0, 0)))   # zero pads: sums unaffected
    s = scale.reshape(1, C).astype(jnp.float32)
    b = bias.reshape(1, C).astype(jnp.float32)
    out = pl.pallas_call(
        functools.partial(_pool_bn_kernel, inv_hw=1.0 / float(HW)),
        out_shape=jax.ShapeDtypeStruct((N, 1, C), jnp.float32),
        grid=(N, HWp // thw),
        in_specs=[pl.BlockSpec((None, thw, C), lambda n, t: (n, t, 0)),
                  pl.BlockSpec((1, C), lambda n, t: (0, 0)),
                  pl.BlockSpec((1, C), lambda n, t: (0, 0))],
        out_specs=pl.BlockSpec((None, 1, C), lambda n, t: (n, 0, 0)),
        compiler_params=pltpu.CompilerParams(
            dimension_semantics=("parallel", "arbitrary")),
    )(x3, s, b)
    return out[:, 0, :]


def se_residual_relu(x3, sx, bx, r3, sr, br, se_logits):
    """relu(bn3(x) * sigmoid(se) + bn_d(residual)); x3/r3: [N, HW, C] raw conv outputs."""
    N, HW, C = x3.shape
    thw = _pick_row_tile(HW)
    HWp = _round_up(HW, thw)
    if HWp > HW:
        x3 = jnp.pad(x3, ((0, 0), (0, HWp - HW), (0, 0)))
        r3 = jnp.pad(r3, ((0, 0), (0, HWp - HW), (0, 0)))
    g = se_logits.reshape(N, 1, C).astype(jnp.float32)
    out = pl.pallas_call(
        _se_residual_kernel,
        out_shape=jax.ShapeDtypeStruct((N, HWp, C), jnp.bfloat16),
        grid=(N, HWp // thw),
        in_specs=[
            pl.BlockSpec((None, thw, C), lambda n, t: (n, t, 0)),
            pl.BlockSpec((1, C), lambda n, t: (0, 0)),
            pl.BlockSpec((1, C), lambda n, t: (0, 0)),
            pl.BlockSpec((None, thw, C), lambda n, t: (n, t, 0)),
            pl.BlockSpec((1, C), lambda n, t: (0, 0)),
            pl.BlockSpec((1, C), lambda n, t: (0, 0)),
            pl.BlockSpec((None, 1, C), lambda n, t: (n, 0, 0)),
        ],
        out_specs=pl.BlockSpec((None, thw, C), lambda n, t: (n, t, 0)),
        compiler_params=pltpu.CompilerParams(
            dimension_semantics=("parallel", "parallel")),
    )(x3,
      sx.reshape(1, C).astype(jnp.float32), bx.reshape(1, C).astype(jnp.float32),
      r3,
      sr.reshape(1, C).astype(jnp.float32), br.reshape(1, C).astype(jnp.float32),
      g)
    return out[:, :HW, :]


def linear_sigmoid(x, w, b):
    """sigmoid(x @ w.T + b).  x: [N, F] f32, w: [O, F] (PyTorch Linear layout)."""
    N, F = x.shape
    O = w.shape[0]
    Np_, Op, Fp = _round_up(N, 8), _round_up(O, 128), _round_up(F, 128)
    xp = jnp.pad(x, ((0, Np_ - N), (0, Fp - F)))
    wp = jnp.pad(w.T, ((0, Fp - F), (0, Op - O)))
    bp = jnp.pad(b.reshape(1, O), ((0, 0), (0, Op - O)))
    out = pl.pallas_call(
        _head_kernel,
        out_shape=jax.ShapeDtypeStruct((Np_, Op), jnp.float32),
        grid=(1,),
        in_specs=[
            pl.BlockSpec((Np_, Fp), lambda i: (0, 0)),
            pl.BlockSpec((Fp, Op), lambda i: (0, 0)),
            pl.BlockSpec((1, Op), lambda i: (0, 0)),
        ],
        out_specs=pl.BlockSpec((Np_, Op), lambda i: (0, 0)),
    )(xp, wp, bp)
    return out[:N, :O]


# ----------------------------------------------------------------------------
# BN stats -> affine, im2col glue, pooling glue
# ----------------------------------------------------------------------------
def _bn_scale_bias(sums, sqs, count, gamma, beta, eps=1e-5):
    mean = sums / count
    var = jnp.maximum(sqs / count - mean * mean, 0.0)   # biased var, as in PyTorch BN
    scale = gamma * jax.lax.rsqrt(var + eps)
    bias = beta - mean * scale
    return scale, bias


def _im2col_dense(x, kh, kw, stride, pad, k_pad=None):
    """Dense im2col -> [M, kh*kw*C] (optionally zero-padded to k_pad columns)."""
    if pad:
        x = jnp.pad(x, ((0, 0), (pad, pad), (pad, pad), (0, 0)))
    N, Hp, Wp, C = x.shape
    Ho = (Hp - kh) // stride + 1
    Wo = (Wp - kw) // stride + 1
    cols = [x[:, i:i + stride * Ho:stride, j:j + stride * Wo:stride, :]
            for i in range(kh) for j in range(kw)]
    K = kh * kw * C
    if k_pad is not None and k_pad > K:
        cols.append(jnp.zeros((N, Ho, Wo, k_pad - K), x.dtype))
        K = k_pad
    a = jnp.concatenate(cols, axis=-1).reshape(N * Ho * Wo, K)
    return a, Ho, Wo


def _im2col_grouped(x, kh, kw, stride, pad):
    """Grouped-conv im2col -> [M, S*kh*kw*128] ordered (supergroup, kernel-pos, lane)."""
    # TODO(synk): implicit im2col (manual DMA of shifted windows) would avoid this copy.
    if pad:
        x = jnp.pad(x, ((0, 0), (pad, pad), (pad, pad), (0, 0)))
    N, Hp, Wp, C = x.shape
    S = C // 128
    Ho = (Hp - kh) // stride + 1
    Wo = (Wp - kw) // stride + 1
    cols = [x[:, i:i + stride * Ho:stride, j:j + stride * Wo:stride, :]
            .reshape(N, Ho, Wo, S, 128)
            for i in range(kh) for j in range(kw)]
    patches = jnp.stack(cols, axis=4)                    # [N, Ho, Wo, S, kk, 128]
    return patches.reshape(N * Ho * Wo, S * kh * kw * 128), Ho, Wo


def maxpool2d_ceil(x, k=3, s=2):
    # MaxPool2d(3, stride=2, ceil_mode=True) -- glue: max over 9 shifted slices.
    N, H, W, C = x.shape
    Ho = -(-(H - k) // s) + 1
    Wo = -(-(W - k) // s) + 1
    Hp = (Ho - 1) * s + k
    Wp = (Wo - 1) * s + k
    x = jnp.pad(x, ((0, 0), (0, Hp - H), (0, Wp - W), (0, 0)),
                constant_values=-jnp.inf)
    out = None
    for i in range(k):
        for j in range(k):
            v = x[:, i:i + s * Ho:s, j:j + s * Wo:s, :]
            out = v if out is None else jnp.maximum(out, v)
    return out


# ----------------------------------------------------------------------------
# Parameters (deterministic synthetic init — no checkpoint loading)
# ----------------------------------------------------------------------------
class KeyGen:
    def __init__(self, seed):
        self._key = jax.random.PRNGKey(seed)

    def __call__(self):
        self._key, sub = jax.random.split(self._key)
        return sub


def _conv_w(kg, cout, cin_g, kh, kw):
    fan_in = cin_g * kh * kw
    return jax.random.normal(kg(), (cout, cin_g, kh, kw), jnp.float32) / np.sqrt(fan_in)


def init_params(seed=0):
    kg = KeyGen(seed)
    params = {"layer0": {
        "conv_w": _conv_w(kg, 64, 3, 7, 7),
        "bn_g": jnp.ones((64,), jnp.float32),
        "bn_b": jnp.zeros((64,), jnp.float32),
    }}
    inplanes = 64
    stages = []
    for planes, nblocks, stride in STAGES:
        width = (planes * 4 // 64) * GROUPS      # base_width = 4
        out_ch = planes * 4
        blocks = []
        for b in range(nblocks):
            blk_stride = stride if b == 0 else 1
            blk = {
                "stride": blk_stride,
                "conv1_w": _conv_w(kg, width, inplanes, 1, 1),
                "bn1_g": jnp.ones((width,), jnp.float32),
                "bn1_b": jnp.zeros((width,), jnp.float32),
                "conv2_w": _conv_w(kg, width, width // GROUPS, 3, 3),
                "bn2_g": jnp.ones((width,), jnp.float32),
                "bn2_b": jnp.zeros((width,), jnp.float32),
                "conv3_w": _conv_w(kg, out_ch, width, 1, 1),
                "bn3_g": jnp.ones((out_ch,), jnp.float32),
                "bn3_b": jnp.zeros((out_ch,), jnp.float32),
                "se_fc1_w": _conv_w(kg, out_ch // REDUCTION, out_ch, 1, 1),
                "se_fc1_b": jnp.zeros((out_ch // REDUCTION,), jnp.float32),
                "se_fc2_w": _conv_w(kg, out_ch, out_ch // REDUCTION, 1, 1),
                "se_fc2_b": jnp.zeros((out_ch,), jnp.float32),
            }
            if b == 0 and (blk_stride != 1 or inplanes != out_ch):
                blk["down_w"] = _conv_w(kg, out_ch, inplanes, 1, 1)
                blk["down_g"] = jnp.ones((out_ch,), jnp.float32)
                blk["down_b"] = jnp.zeros((out_ch,), jnp.float32)
            blocks.append(blk)
            inplanes = out_ch
        stages.append(blocks)
    params["stages"] = stages
    params["l0_w"] = jax.random.normal(kg(), (1, 2048), jnp.float32) * 0.02
    params["l0_b"] = jnp.zeros((1,), jnp.float32)
    return params


def _pack_grouped_weight(w):
    """[Cout, Cg, 3, 3] grouped-conv weight -> block-diagonal [S, 9*128, 128] bf16,
    with the 9 kernel positions folded into the K (row) dimension."""
    Cout, Cg, kh, kw = w.shape
    S = Cout // 128
    P = 128 // Cg
    kk = kh * kw
    w5 = w.reshape(GROUPS, Cg, Cg, kh, kw)                          # [g, out a, in b, ki, kj]
    wt = jnp.transpose(w5, (3, 4, 0, 2, 1)).reshape(kk, S, P, Cg, Cg)  # [kk, s, p, in, out]
    eye_p = jnp.eye(P, dtype=w.dtype)
    wb = jnp.einsum('kspio,pq->kspiqo', wt, eye_p)                  # block-diag per supergroup
    wb = wb.reshape(kk, S, 128, 128)
    wb = jnp.transpose(wb, (1, 0, 2, 3)).reshape(S, kk * 128, 128)  # rows ordered (kk, lane)
    return wb.astype(jnp.bfloat16)


def prepare_params(params):
    """One-time weight repacking into the exact layouts the Pallas BlockSpecs want."""
    # Stem: [64,3,7,7] -> [K=256 (147 real, zero-padded), 128 (64 real)] bf16.
    w = params["layer0"]["conv_w"]
    k_real = 7 * 7 * 3
    k_pad = _round_up(k_real, 128)
    w2d = jnp.transpose(w, (2, 3, 1, 0)).reshape(k_real, 64)
    w2d = jnp.pad(w2d, ((0, k_pad - k_real), (0, 128 - 64)))
    prep = {"layer0": {
        "w2d": w2d.astype(jnp.bfloat16),
        "k_pad": k_pad,
        "bn_g": jnp.pad(params["layer0"]["bn_g"], (0, 64)),
        "bn_b": jnp.pad(params["layer0"]["bn_b"], (0, 64)),
    }}
    stages = []
    for blocks in params["stages"]:
        pblocks = []
        for p in blocks:
            cin = p["conv1_w"].shape[1]
            cin_p = _round_up(cin, 128)          # stem output is kept lane-dense (128 ch)
            w1 = p["conv1_w"][:, :, 0, 0].T
            if cin_p > cin:
                w1 = jnp.pad(w1, ((0, cin_p - cin), (0, 0)))
            blk = {
                "stride": p["stride"],
                "w1": w1.astype(jnp.bfloat16),
                "bn1_g": p["bn1_g"], "bn1_b": p["bn1_b"],
                "w2": _pack_grouped_weight(p["conv2_w"]),
                "bn2_g": p["bn2_g"], "bn2_b": p["bn2_b"],
                "w3": p["conv3_w"][:, :, 0, 0].T.astype(jnp.bfloat16),
                "bn3_g": p["bn3_g"], "bn3_b": p["bn3_b"],
                "se_w1": p["se_fc1_w"][:, :, 0, 0],
                "se_b1": p["se_fc1_b"],
                "se_w2": p["se_fc2_w"][:, :, 0, 0],
                "se_b2": p["se_fc2_b"],
            }
            if "down_w" in p:
                wd = p["down_w"][:, :, 0, 0].T
                if cin_p > cin:
                    wd = jnp.pad(wd, ((0, cin_p - cin), (0, 0)))
                blk["wd"] = wd.astype(jnp.bfloat16)
                blk["down_g"] = p["down_g"]
                blk["down_b"] = p["down_b"]
            pblocks.append(blk)
        stages.append(pblocks)
    prep["stages"] = stages
    prep["l0_w"] = params["l0_w"]
    prep["l0_b"] = params["l0_b"]
    return prep


# ----------------------------------------------------------------------------
# Forward pass (mirrors SEResnext50_32x4d.forward; BN uses batch statistics)
# ----------------------------------------------------------------------------
def bottleneck_forward(x, p):
    N, H, W, Cin = x.shape
    stride = p["stride"]
    M_in = N * H * W

    # conv1 (1x1) + BN1 + ReLU (standalone affine: conv2's spatial zero-pad must be 0)
    y1, s1, q1 = _matmul_bn(x.reshape(M_in, Cin), p["w1"], M_in)
    width = p["w1"].shape[1]
    sc1, bi1 = _bn_scale_bias(s1, q1, M_in, p["bn1_g"], p["bn1_b"])
    z1 = scale_bias_act(y1, sc1, bi1, relu=True)[:M_in].reshape(N, H, W, width)

    # conv2 (3x3 grouped, stride): raw output; BN2+ReLU deferred into conv3's prologue
    a2, Ho, Wo = _im2col_grouped(z1, 3, 3, stride, 1)
    M_out = N * Ho * Wo
    y2, s2, q2 = _grouped_mm_bn(a2, p["w2"], M_out)
    sc2, bi2 = _bn_scale_bias(s2, q2, M_out, p["bn2_g"], p["bn2_b"])

    # conv3 (1x1) with BN2-affine + ReLU fused on the A operand; BN3 deferred further
    y3, s3, q3 = _matmul_bn(y2, p["w3"], M_out, prologue=(sc2, bi2))
    out_ch = p["w3"].shape[1]
    sc3, bi3 = _bn_scale_bias(s3, q3, M_out, p["bn3_g"], p["bn3_b"])

    # residual path (downsample BN deferred into the SE/residual kernel)
    if "wd" in p:
        xs = x[:, ::stride, ::stride, :] if stride > 1 else x
        yd, sd, qd = _matmul_bn(xs.reshape(M_out, Cin), p["wd"], M_out)
        scd, bid = _bn_scale_bias(sd, qd, M_out, p["down_g"], p["down_b"])
        r3 = yd[:M_out].reshape(N, Ho * Wo, out_ch)
    else:
        r3 = x.reshape(N, Ho * Wo, out_ch)
        scd = jnp.ones((out_ch,), jnp.float32)
        bid = jnp.zeros((out_ch,), jnp.float32)

    # Squeeze-and-Excitation (BN3 affine fused into the pool and gate/residual kernels)
    x3 = y3[:M_out].reshape(N, Ho * Wo, out_ch)
    pooled = spatial_mean_bn(x3, sc3, bi3)                       # [N, out_ch] f32
    # tiny (M = batch) squeeze FCs -> plain JAX, not worth padded MXU launches
    h = jnp.maximum(pooled @ p["se_w1"].T + p["se_b1"], 0.0)
    se_logits = h @ p["se_w2"].T + p["se_b2"]

    out = se_residual_relu(x3, sc3, bi3, r3, scd, bid, se_logits)
    return out.reshape(N, Ho, Wo, out_ch)


def forward(params, image, targets=None):
    # image arrives NCHW (PyTorch convention); transpose to internal NHWC layout.
    x = jnp.transpose(image, (0, 2, 3, 1)).astype(jnp.bfloat16)
    N = x.shape[0]
    p0 = params["layer0"]
    # stem: 7x7/2 conv; patches built directly at the 128-aligned K width (no extra pad pass)
    a0, Ho, Wo = _im2col_dense(x, 7, 7, 2, 3, k_pad=p0["k_pad"])
    M0 = N * Ho * Wo
    y0, s0, q0 = _matmul_bn(a0, p0["w2d"], M0)
    sc0, bi0 = _bn_scale_bias(s0, q0, M0, p0["bn_g"], p0["bn_b"])
    x = scale_bias_act(y0, sc0, bi0, relu=True)[:M0].reshape(N, Ho, Wo, 128)
    x = maxpool2d_ceil(x, 3, 2)

    for blocks in params["stages"]:
        for blk in blocks:
            x = bottleneck_forward(x, blk)

    N2, Hf, Wf, Cf = x.shape
    feats = spatial_mean_bn(x.reshape(N2, Hf * Wf, Cf),
                            jnp.ones((Cf,), jnp.float32),
                            jnp.zeros((Cf,), jnp.float32))
    out = linear_sigmoid(feats, params["l0_w"], params["l0_b"])
    loss = 0                                 # module returns loss = 0
    return out, loss


if __name__ == "__main__":
    key = jax.random.PRNGKey(0)
    k_img, k_tgt = jax.random.split(key)
    # Small-but-valid shapes: batch=2, 3 input channels, 32x32 spatial (NCHW like PyTorch).
    image = jax.random.normal(k_img, (2, 3, 32, 32), jnp.float32)
    targets = jax.random.normal(k_tgt, (2, 1), jnp.float32)

    params = prepare_params(init_params(seed=0))
    out, loss = forward(params, image, targets)
    out = jax.block_until_ready(out)

    assert out.shape == (2, 1)
    assert bool(jnp.all(jnp.isfinite(out))), "non-finite output"
    assert bool(jnp.all((out >= 0.0) & (out <= 1.0))), "sigmoid output out of range"
    print("KERNEL_OK")
</pallas_src>

<mosaic_0001>
module attributes {stable_mosaic.version = 11 : i64} {
  func.func @_mm_bn_kernel(%arg0: i32, %arg1: i32, %arg2: i32, %arg3: memref<512x256xbf16, #tpu.memory_space<vmem>>, %arg4: memref<256x128xbf16, #tpu.memory_space<vmem>>, %arg5: memref<512x128xbf16, #tpu.memory_space<vmem>>, %arg6: memref<1x1x128xf32, #tpu.memory_space<vmem>>, %arg7: memref<1x1x128xf32, #tpu.memory_space<vmem>>, %arg8: memref<512x128xf32, #tpu.memory_space<vmem>>) attributes {dimension_semantics = [#tpu.dimension_semantics<parallel>, #tpu.dimension_semantics<parallel>, #tpu.dimension_semantics<arbitrary>], iteration_bounds = array<i64: 1, 1, 1>, scalar_prefetch = 0 : i64, scratch_operands = 1 : i64, tpu.core_type = #tpu.core_type<tc>, window_params = [{transform_indices = @transform_0, window_bounds = array<i64: 512, 256>}, {transform_indices = @transform_1, window_bounds = array<i64: 256, 128>}, {transform_indices = @transform_2, window_bounds = array<i64: 512, 128>}, {transform_indices = @transform_3, window_bounds = array<i64: 1, 1, 128>}, {transform_indices = @transform_4, window_bounds = array<i64: 1, 1, 128>}]} {
    %c0_i32 = arith.constant 0 : i32
    %0 = arith.cmpi eq, %arg2, %c0_i32 : i32
    %1 = arith.extui %0 : i1 to i32
    %c0_i32_0 = arith.constant 0 : i32
    %2 = arith.cmpi ne, %1, %c0_i32_0 : i32
    scf.if %2 {
      %cst_10 = arith.constant 0.000000e+00 : f32
      %12 = vector.broadcast %cst_10 : f32 to vector<512x128xf32>
      %c0_11 = arith.constant 0 : index
      %c0_12 = arith.constant 0 : index
      %13 = vector.load %arg8[%c0_11, %c0_12] : memref<512x128xf32, #tpu.memory_space<vmem>>, vector<512x128xf32>
      tpu.vector_store %arg8[%c0_11, %c0_12], %12 {strides = array<i32>} : memref<512x128xf32, #tpu.memory_space<vmem>>, vector<512x128xf32>,
    } else {
    }
    %c0 = arith.constant 0 : index
    %c0_1 = arith.constant 0 : index
    %3 = vector.load %arg8[%c0, %c0_1] : memref<512x128xf32, #tpu.memory_space<vmem>>, vector<512x128xf32>
    %c0_2 = arith.constant 0 : index
    %c0_3 = arith.constant 0 : index
    %4 = vector.load %arg3[%c0_2, %c0_3] : memref<512x256xbf16, #tpu.memory_space<vmem>>, vector<512x256xbf16>
    %c0_4 = arith.constant 0 : index
    %c0_5 = arith.constant 0 : index
    %5 = vector.load %arg4[%c0_4, %c0_5] : memref<256x128xbf16, #tpu.memory_space<vmem>>, vector<256x128xbf16>
    %cst = arith.constant dense<0.000000e+00> : vector<512x128xf32>
    %6 = tpu.matmul %4, %5, %cst {dimension_numbers = #tpu.dot_dimension_numbers<[1], [0], [0], [1], [0, 0, 1, 1], [], []>} : vector<512x256xbf16>, vector<256x128xbf16>, vector<512x128xf32> -> vector<512x128xf32>
    %7 = arith.addf %3, %6 : vector<512x128xf32>
    %c0_6 = arith.constant 0 : index
    %c0_7 = arith.constant 0 : index
    %8 = vector.load %arg8[%c0_6, %c0_7] : memref<512x128xf32, #tpu.memory_space<vmem>>, vector<512x128xf32>
    tpu.vector_store %arg8[%c0_6, %c0_7], %7 {strides = array<i32>} : memref<512x128xf32, #tpu.memory_space<vmem>>, vector<512x128xf32>,
    %c0_i32_8 = arith.constant 0 : i32
    %9 = arith.cmpi eq, %arg2, %c0_i32_8 : i32
    %10 = arith.extui %9 : i1 to i32
    %c0_i32_9 = arith.constant 0 : i32
    %11 = arith.cmpi ne, %10, %c0_i32_9 : i32
    scf.if %11 {
      %c0_10 = arith.constant 0 : index
      %c0_11 = arith.constant 0 : index
      %12 = vector.load %arg8[%c0_10, %c0_11] : memref<512x128xf32, #tpu.memory_space<vmem>>, vector<512x128xf32>
      %13 = arith.truncf %12 : vector<512x128xf32> to vector<512x128xbf16>
      %c0_12 = arith.constant 0 : index
      %c0_13 = arith.constant 0 : index
      %14 = vector.load %arg5[%c0_12, %c0_13] : memref<512x128xbf16, #tpu.memory_space<vmem>>, vector<512x128xbf16>
      tpu.vector_store %arg5[%c0_12, %c0_13], %13 {strides = array<i32>} : memref<512x128xbf16, #tpu.memory_space<vmem>>, vector<512x128xbf16>,
      %cst_14 = arith.constant dense<0.000000e+00> : vector<128xf32>
      %15 = vector.multi_reduction <add>, %12, %cst_14 [0] : vector<512x128xf32> to vector<128xf32>
      %16 = vector.shape_cast %15 : vector<128xf32> to vector<1x128xf32>
      %c0_15 = arith.constant 0 : index
      %c0_16 = arith.constant 0 : index
      %c0_17 = arith.constant 0 : index
      %17 = vector.load %arg6[%c0_15, %c0_16, %c0_17] : memref<1x1x128xf32, #tpu.memory_space<vmem>>, vector<1x1x128xf32>
      %18 = vector.shape_cast %17 : vector<1x1x128xf32> to vector<1x128xf32>
      %19 = vector.shape_cast %16 : vector<1x128xf32> to vector<1x1x128xf32>
      tpu.vector_store %arg6[%c0_15, %c0_16, %c0_17], %19 {strides = array<i32>} : memref<1x1x128xf32, #tpu.memory_space<vmem>>, vector<1x1x128xf32>,
      %20 = arith.mulf %12, %12 : vector<512x128xf32>
      %cst_18 = arith.constant dense<0.000000e+00> : vector<128xf32>
      %21 = vector.multi_reduction <add>, %20, %cst_18 [0] : vector<512x128xf32> to vector<128xf32>
      %22 = vector.shape_cast %21 : vector<128xf32> to vector<1x128xf32>
      %c0_19 = arith.constant 0 : index
      %c0_20 = arith.constant 0 : index
      %c0_21 = arith.constant 0 : index
      %23 = vector.load %arg7[%c0_19, %c0_20, %c0_21] : memref<1x1x128xf32, #tpu.memory_space<vmem>>, vector<1x1x128xf32>
      %24 = vector.shape_cast %23 : vector<1x1x128xf32> to vector<1x128xf32>
      %25 = vector.shape_cast %22 : vector<1x128xf32> to vector<1x1x128xf32>
      tpu.vector_store %arg7[%c0_19, %c0_20, %c0_21], %25 {strides = array<i32>} : memref<1x1x128xf32, #tpu.memory_space<vmem>>, vector<1x1x128xf32>,
    } else {
    }
    return
  }
  func.func @transform_0(%arg0: i32, %arg1: i32, %arg2: i32) -> (i32, i32) {
    %c0_i32 = arith.constant 0 : i32
    return %arg0, %arg2 : i32, i32
  }
  func.func @transform_1(%arg0: i32, %arg1: i32, %arg2: i32) -> (i32, i32) {
    %c0_i32 = arith.constant 0 : i32
    return %arg2, %arg1 : i32, i32
  }
  func.func @transform_2(%arg0: i32, %arg1: i32, %arg2: i32) -> (i32, i32) {
    %c0_i32 = arith.constant 0 : i32
    return %arg0, %arg1 : i32, i32
  }
  func.func @transform_3(%arg0: i32, %arg1: i32, %arg2: i32) -> (i32, i32, i32) {
    %c0_i32 = arith.constant 0 : i32
    %c0_i32_0 = arith.constant 0 : i32
    return %arg0, %c0_i32, %arg1 : i32, i32, i32
  }
  func.func @transform_4(%arg0: i32, %arg1: i32, %arg2: i32) -> (i32, i32, i32) {
    %c0_i32 = arith.constant 0 : i32
    %c0_i32_0 = arith.constant 0 : i32
    return %arg0, %c0_i32, %arg1 : i32, i32, i32
  }
}

</mosaic_0001>

<bundles_post_ra>
// kernel: tpu_custom_call.1
= control target key start
LH: loop header
LB: loop body
LE: loop exit
PB: predicated region body
PF: predicated region fallthrough
CT: control target
= control target key end

     0   :  { %10 = vsyncpa [#allocation4], 0  ;;  %s2815_s0 = inlined_call_operand.hbm [shape: bf16[512,256], index: 0, kind: input, shape index: {}]   ;;  %s2816_s1 = inlined_call_operand.hbm [shape: bf16[256,128], index: 1, kind: input, shape index: {}]   ;;  %s2817_s2 = inlined_call_operand.hbm [shape: bf16[512,128], index: 2, kind: output, shape index: {0}]   ;;  %s2818_s3 = inlined_call_operand.hbm [shape: f32[1,1,128], index: 3, kind: output, shape index: {1}]   ;;  %s2819_s4 = inlined_call_operand.hbm [shape: f32[1,1,128], index: 4, kind: output, shape index: {2}]  }
   0x1   :  { %11 = vsyncpa [#allocation7], 0 }
   0x2   :  { %12 = vsyncpa [#allocation5], 0 }
   0x3   :  { %13 = vsyncpa [#allocation10], 0  ;;  %s2403_s15 = smov [#allocation3]  }
   0x4   :  { %s19_s16 = sshll.u32 %s2403_s15, 4  ;;  %s20_s16 = int_to_ptr.vmem [resolvable:$true] %s19_s16 }
   0x5   :  { %s2303_s17 = scalar_lea.vmem %s20_s16, 8192  ;;  %p2308_p1 = scmp.lt.s32.totalorder %s20_s16, %s20_s16 }
   0x6   :  { %p2304_p0 = scmp.ne.s32.totalorder %s20_s16, %s2303_s17  ;;  %p2309_p2 = scmp.lt.s32.totalorder %s2303_s17, %s2303_s17 }
   0x8   :  { %p2310_p3 = por %p2309_p2, %p2308_p1 }
   0xa   :  { %p2311_p4 = pnand %p2310_p3, %p2304_p0 }
   0xc   :  { %2314 = shalt.err (!%p2311_p4)
}
   0xd   :  { %s2404_s18 = smov 128   ;;  %s2405_s19 = smov 8  }
   0xe   :  { %25 = dma.hbm_to_vmem [thread:$0]  %s2815_s0, 8192, %s20_s16, [#allocation4], %s2404_s18, %s2404_s18, %s2405_s19  }
   0xf   :  { %s2406_s22 = smov [#allocation6]  }
  0x10   :  { %s31_s23 = sshll.u32 %s2406_s22, 4  ;;  %s32_s23 = int_to_ptr.vmem [resolvable:$true] %s31_s23 }
  0x11   :  { %s2323_s24 = scalar_lea.vmem %s32_s23, 2048  ;;  %p2328_p6 = scmp.lt.s32.totalorder %s32_s23, %s32_s23 }
  0x12   :  { %p2324_p5 = scmp.ne.s32.totalorder %s32_s23, %s2323_s24  ;;  %p2329_p7 = scmp.lt.s32.totalorder %s2323_s24, %s2323_s24 }
  0x14   :  { %p2330_p8 = por %p2329_p7, %p2328_p6 }
  0x16   :  { %p2331_p9 = pnand %p2330_p8, %p2324_p5 }
  0x18   :  { %2334 = shalt.err (!%p2331_p9)
}
  0x19   :  { %s2407_s25 = smov 64   ;;  %s2408_s26 = smov 4  }
  0x1a   :  { %37 = dma.hbm_to_vmem [thread:$0]  %s2816_s1, 2048, %s32_s23, [#allocation7], %s2407_s25, %s2407_s25, %s2408_s26  }
  0x1b   :  { %2395 = dma.done.wait [#allocation4], 8192  }
  0x1c   :  { %2396 = vsyncadd [#allocation4], 4294959104 }
  0x1d   :  { %2397 = dma.done.wait [#allocation7], 2048  }
  0x1e   :  { %2398 = vsyncadd [#allocation7], 4294965248  ;;  %v2409_v0 = vmov 0   ;;  %v2183_v1 = vld [vmem:[#allocation6 + $0x38] sm:$0xff]   ;;  %v2184_v2 = vld [vmem:[#allocation6 + $0x30] sm:$0xff]   ;;  %s2410_s0 = smov [#allocation8]  }
  0x1f   :  { %689 = vmatprep.subr.bf16.mxu0 %v2409_v0  ;;  %2141 = vmatprep.subr.bf16.mxu1 %v2409_v0  ;;  %v2185_v3 = vld [vmem:[#allocation6 + $0x28] sm:$0xff]   ;;  %v2186_v4 = vld [vmem:[#allocation6 + $0x20] sm:$0xff]   ;;  %v2187_v5 = vld [vmem:[#allocation6 + $0x18] sm:$0xff]   ;;  %s1702_s1 = sshll.u32 %s2410_s0, 4  ;;  %s1703_s1 = int_to_ptr.vmem [resolvable:$true] %s1702_s1 }
  0x20   :  { %690 = vmatpush1.bf16.msra.mxu0 %v2183_v1  ;;  %2157 = vmatpush1.bf16.msra.mxu1 %v2183_v1  ;;  %v2201_v6 = vld [vmem:[#allocation3 + $0x4] ss:$8 sps:$4 sm:$0xff]   ;;  %v2188_v7 = vld [vmem:[#allocation6 + $0x10] sm:$0xff]   ;;  %v2191_v11 = vld [vmem:[#allocation6 + $0x78] sm:$0xff]   ;;  %s2335_s29 = scalar_lea.vmem %s1703_s1, 4096  ;;  %p2340_p11 = scmp.lt.s32.totalorder %s1703_s1, %s1703_s1 }
  0x21   :  { %691 = vmatprep.subr.bf16.mxu0 %v2409_v0  ;;  %2142 = vmatprep.subr.bf16.mxu1 %v2409_v0  ;;  %v2189_v8 = vld [vmem:[#allocation6 + $0x8] sm:$0xff]   ;;  %v2190_v9 = vld [vmem:[#allocation6] sm:$0xff]   ;;  %v2192_v12 = vld [vmem:[#allocation6 + $0x70] sm:$0xff]   ;;  %p2336_p10 = scmp.ne.s32.totalorder %s1703_s1, %s2335_s29  ;;  %p2341_p12 = scmp.lt.s32.totalorder %s2335_s29, %s2335_s29 }
  0x22   :  { %721 = vmatprep.mubr.bf16.mxu0 %v2201_v6  ;;  %v2225_v10 = vld [vmem:[#allocation3 + $0x104] ss:$8 sps:$4 sm:$0xff]   ;;  %v2195_v15 = vld [vmem:[#allocation6 + $0x58] sm:$0xff]   ;;  %v2196_v16 = vld [vmem:[#allocation6 + $0x50] sm:$0xff]  }
  0x23   :  { %849 = vmatprep.mubr.bf16.mxu1 %v2225_v10  ;;  %v2193_v13 = vld [vmem:[#allocation6 + $0x68] sm:$0xff]   ;;  %v2194_v14 = vld [vmem:[#allocation6 + $0x60] sm:$0xff]   ;;  %v2202_v21 = vld [vmem:[#allocation3 + $0x14] ss:$8 sps:$4 sm:$0xff]   ;;  %p2342_p13 = por %p2341_p12, %p2340_p11 }
  0x24   :  { %692 = vmatpush1.bf16.msra.mxu0 %v2184_v2  ;;  %2158 = vmatpush1.bf16.msra.mxu1 %v2184_v2  ;;  %v2197_v17 = vld [vmem:[#allocation6 + $0x48] sm:$0xff]   ;;  %v2198_v18 = vld [vmem:[#allocation6 + $0x40] sm:$0xff]   ;;  %v2229_v22 = vld [vmem:[#allocation3 + $0x114] ss:$8 sps:$4 sm:$0xff]  }
  0x25   :  { %693 = vmatprep.subr.bf16.mxu0 %v2409_v0  ;;  %2143 = vmatprep.subr.bf16.mxu1 %v2409_v0  ;;  %v2199_v19 = vld [vmem:[#allocation3] ss:$8 sps:$4 sm:$0xff]   ;;  %v2204_v23 = vld [vmem:[#allocation3 + $0x10] ss:$8 sps:$4 sm:$0xff]   ;;  %v2205_v25 = vld [vmem:[#allocation3 + $0x24] ss:$8 sps:$4 sm:$0xff]   ;;  %p2343_p0 = pnand %p2342_p13, %p2336_p10 }
  0x26   :  { %v2223_v20 = vld [vmem:[#allocation3 + $0x100] ss:$8 sps:$4 sm:$0xff]   ;;  %v2231_v24 = vld [vmem:[#allocation3 + $0x110] ss:$8 sps:$4 sm:$0xff]   ;;  %v2235_v26 = vld [vmem:[#allocation3 + $0x124] ss:$8 sps:$4 sm:$0xff]  }
  0x27   :  { %v2207_v27 = vld [vmem:[#allocation3 + $0x20] ss:$8 sps:$4 sm:$0xff]   ;;  %v2208_v29 = vld [vmem:[#allocation3 + $0x34] ss:$8 sps:$4 sm:$0xff]   ;;  %v2210_v31 = vld [vmem:[#allocation3 + $0x30] ss:$8 sps:$4 sm:$0xff]  }
  0x28   :  { %694 = vmatpush1.bf16.msra.mxu0 %v2185_v3  ;;  %2159 = vmatpush1.bf16.msra.mxu1 %v2185_v3  ;;  %v2237_v28 = vld [vmem:[#allocation3 + $0x120] ss:$8 sps:$4 sm:$0xff]   ;;  %v2241_v30 = vld [vmem:[#allocation3 + $0x134] ss:$8 sps:$4 sm:$0xff]   ;;  %v2243_v32 = vld [vmem:[#allocation3 + $0x130] ss:$8 sps:$4 sm:$0xff]  }
  0x29   :  { %695 = vmatprep.subr.bf16.mxu0 %v2409_v0  ;;  %2144 = vmatprep.subr.bf16.mxu1 %v2409_v0  ;;  %v2211_v33 = vld [vmem:[#allocation3 + $0x44] ss:$8 sps:$4 sm:$0xff]   ;;  %v2213_v35 = vld [vmem:[#allocation3 + $0x40] ss:$8 sps:$4 sm:$0xff]   ;;  %v2214_v37 = vld [vmem:[#allocation3 + $0x54] ss:$8 sps:$4 sm:$0xff]  }
  0x2a   :  { %v2247_v34 = vld [vmem:[#allocation3 + $0x144] ss:$8 sps:$4 sm:$0xff]   ;;  %v2249_v36 = vld [vmem:[#allocation3 + $0x140] ss:$8 sps:$4 sm:$0xff]   ;;  %v2253_v38 = vld [vmem:[#allocation3 + $0x154] ss:$8 sps:$4 sm:$0xff]  }
  0x2b   :  { %v2216_v39 = vld [vmem:[#allocation3 + $0x50] ss:$8 sps:$4 sm:$0xff]   ;;  %v2217_v41 = vld [vmem:[#allocation3 + $0x64] ss:$8 sps:$4 sm:$0xff]   ;;  %v2219_v43 = vld [vmem:[#allocation3 + $0x60] ss:$8 sps:$4 sm:$0xff]  }
  0x2c   :  { %696 = vmatpush1.bf16.msra.mxu0 %v2186_v4  ;;  %2160 = vmatpush1.bf16.msra.mxu1 %v2186_v4  ;;  %v2255_v40 = vld [vmem:[#allocation3 + $0x150] ss:$8 sps:$4 sm:$0xff]   ;;  %v2259_v42 = vld [vmem:[#allocation3 + $0x164] ss:$8 sps:$4 sm:$0xff]   ;;  %v2261_v44 = vld [vmem:[#allocation3 + $0x160] ss:$8 sps:$4 sm:$0xff]  }
  0x2d   :  { %697 = vmatprep.subr.bf16.mxu0 %v2409_v0  ;;  %2145 = vmatprep.subr.bf16.mxu1 %v2409_v0  ;;  %v2220_v45 = vld [vmem:[#allocation3 + $0x74] ss:$8 sps:$4 sm:$0xff]   ;;  %v2222_v47 = vld [vmem:[#allocation3 + $0x70] ss:$8 sps:$4 sm:$0xff]   ;;  %v2226_v49 = vld [vmem:[#allocation3 + $0x84] ss:$8 sps:$4 sm:$0xff]  }
  0x2e   :  { %v2265_v46 = vld [vmem:[#allocation3 + $0x174] ss:$8 sps:$4 sm:$0xff]   ;;  %v2267_v48 = vld [vmem:[#allocation3 + $0x170] ss:$8 sps:$4 sm:$0xff]   ;;  %v2271_v50 = vld [vmem:[#allocation3 + $0x184] ss:$8 sps:$4 sm:$0xff]  }
  0x2f   :  { %v2228_v51 = vld [vmem:[#allocation3 + $0x80] ss:$8 sps:$4 sm:$0xff]   ;;  %v2232_v53 = vld [vmem:[#allocation3 + $0x94] ss:$8 sps:$4 sm:$0xff]   ;;  %v2234_v55 = vld [vmem:[#allocation3 + $0x90] ss:$8 sps:$4 sm:$0xff]  }
  0x30   :  { %698 = vmatpush1.bf16.msra.mxu0 %v2187_v5  ;;  %2161 = vmatpush1.bf16.msra.mxu1 %v2187_v5  ;;  %v2273_v52 = vld [vmem:[#allocation3 + $0x180] ss:$8 sps:$4 sm:$0xff]   ;;  %v2274_v54 = vld [vmem:[#allocation3 + $0x194] ss:$8 sps:$4 sm:$0xff]   ;;  %v2276_v56 = vld [vmem:[#allocation3 + $0x190] ss:$8 sps:$4 sm:$0xff]  }
  0x31   :  { %699 = vmatprep.subr.bf16.mxu0 %v2409_v0  ;;  %2146 = vmatprep.subr.bf16.mxu1 %v2409_v0  ;;  %v2238_v57 = vld [vmem:[#allocation3 + $0xa4] ss:$8 sps:$4 sm:$0xff]   ;;  %v2240_v59 = vld [vmem:[#allocation3 + $0xa0] ss:$8 sps:$4 sm:$0xff]   ;;  %v2244_v61 = vld [vmem:[#allocation3 + $0xb4] ss:$8 sps:$4 sm:$0xff]  }
  0x32   :  { %v2277_v58 = vld [vmem:[#allocation3 + $0x1a4] ss:$8 sps:$4 sm:$0xff]   ;;  %v2279_v60 = vld [vmem:[#allocation3 + $0x1a0] ss:$8 sps:$4 sm:$0xff]   ;;  %v2280_v62 = vld [vmem:[#allocation3 + $0x1b4] ss:$8 sps:$4 sm:$0xff]  }
  0x33   :  { %v2246_v63 = vld [vmem:[#allocation3 + $0xb0] ss:$8 sps:$4 sm:$0xff]   ;;  %v2250_v1 = vld [vmem:[#allocation3 + $0xc4] ss:$8 sps:$4 sm:$0xff]   ;;  %v2252_v3 = vld [vmem:[#allocation3 + $0xc0] ss:$8 sps:$4 sm:$0xff]  }
  0x34   :  { %700 = vmatpush1.bf16.msra.mxu0 %v2188_v7  ;;  %2162 = vmatpush1.bf16.msra.mxu1 %v2188_v7  ;;  %v2283_v2 = vld [vmem:[#allocation3 + $0x1c4] ss:$8 sps:$4 sm:$0xff]   ;;  %v2285_v4 = vld [vmem:[#allocation3 + $0x1c0] ss:$8 sps:$4 sm:$0xff]   ;;  %v2256_v5 = vld [vmem:[#allocation3 + $0xd4] ss:$8 sps:$4 sm:$0xff]  }
  0x35   :  { %701 = vmatprep.subr.bf16.mxu0 %v2409_v0  ;;  %2147 = vmatprep.subr.bf16.mxu1 %v2409_v0  ;;  %v2286_v6 = vld [vmem:[#allocation3 + $0x1d4] ss:$8 sps:$4 sm:$0xff]   ;;  %v2258_v7 = vld [vmem:[#allocation3 + $0xd0] ss:$8 sps:$4 sm:$0xff]   ;;  %v2289_v10 = vld [vmem:[#allocation3 + $0x1e4] ss:$8 sps:$4 sm:$0xff]  }
  0x38   :  { %702 = vmatpush1.bf16.msra.mxu0 %v2189_v8  ;;  %2163 = vmatpush1.bf16.msra.mxu1 %v2189_v8  ;;  %v2288_v8 = vld [vmem:[#allocation3 + $0x1d0] ss:$8 sps:$4 sm:$0xff]  }
  0x39   :  { %703 = vmatprep.subr.bf16.mxu0 %v2409_v0  ;;  %2148 = vmatprep.subr.bf16.mxu1 %v2409_v0 }
  0x3c   :  { %704 = vmatpush1.bf16.msra.mxu0 %v2190_v9  ;;  %2164 = vmatpush1.bf16.msra.mxu1 %v2190_v9  ;;  %v2262_v9 = vld [vmem:[#allocation3 + $0xe4] ss:$8 sps:$4 sm:$0xff]  }
  0x3d   :  { %705 = vmatprep.subr.bf16.mxu0 %v2409_v0  ;;  %2149 = vmatprep.subr.bf16.mxu1 %v2409_v0 }
  0x40   :  { %706 = vmatpush2.bf16.msra.mxu0 %v2191_v11  ;;  %2165 = vmatpush2.bf16.msra.mxu1 %v2191_v11  ;;  %v2264_v11 = vld [vmem:[#allocation3 + $0xe0] ss:$8 sps:$4 sm:$0xff]  }
  0x41   :  { %707 = vmatprep.subr.bf16.mxu0 %v2409_v0  ;;  %2150 = vmatprep.subr.bf16.mxu1 %v2409_v0 }
  0x44   :  { %708 = vmatpush2.bf16.msra.mxu0 %v2192_v12  ;;  %2166 = vmatpush2.bf16.msra.mxu1 %v2192_v12  ;;  %v2291_v12 = vld [vmem:[#allocation3 + $0x1e0] ss:$8 sps:$4 sm:$0xff]  }
  0x45   :  { %709 = vmatprep.subr.bf16.mxu0 %v2409_v0  ;;  %2151 = vmatprep.subr.bf16.mxu1 %v2409_v0 }
  0x48   :  { %710 = vmatpush2.bf16.msra.mxu0 %v2193_v13  ;;  %2167 = vmatpush2.bf16.msra.mxu1 %v2193_v13  ;;  %v2268_v13 = vld [vmem:[#allocation3 + $0xf4] ss:$8 sps:$4 sm:$0xff]  }
  0x49   :  { %711 = vmatprep.subr.bf16.mxu0 %v2409_v0  ;;  %2152 = vmatprep.subr.bf16.mxu1 %v2409_v0 }
  0x4c   :  { %712 = vmatpush2.bf16.msra.mxu0 %v2194_v14  ;;  %2168 = vmatpush2.bf16.msra.mxu1 %v2194_v14  ;;  %v2292_v14 = vld [vmem:[#allocation3 + $0x1f4] ss:$8 sps:$4 sm:$0xff]  }
  0x4d   :  { %713 = vmatprep.subr.bf16.mxu0 %v2409_v0  ;;  %2153 = vmatprep.subr.bf16.mxu1 %v2409_v0 }
  0x50   :  { %714 = vmatpush2.bf16.msra.mxu0 %v2195_v15  ;;  %2169 = vmatpush2.bf16.msra.mxu1 %v2195_v15  ;;  %v2270_v15 = vld [vmem:[#allocation3 + $0xf0] ss:$8 sps:$4 sm:$0xff]  }
  0x51   :  { %715 = vmatprep.subr.bf16.mxu0 %v2409_v0  ;;  %2154 = vmatprep.subr.bf16.mxu1 %v2409_v0 }
  0x54   :  { %716 = vmatpush2.bf16.msra.mxu0 %v2196_v16  ;;  %2170 = vmatpush2.bf16.msra.mxu1 %v2196_v16  ;;  %v2294_v16 = vld [vmem:[#allocation3 + $0x1f0] ss:$8 sps:$4 sm:$0xff]  }
  0x55   :  { %717 = vmatprep.subr.bf16.mxu0 %v2409_v0  ;;  %2155 = vmatprep.subr.bf16.mxu1 %v2409_v0 }
  0x58   :  { %718 = vmatpush2.bf16.msra.mxu0 %v2197_v17  ;;  %2171 = vmatpush2.bf16.msra.mxu1 %v2197_v17 }
  0x59   :  { %719 = vmatprep.subr.bf16.mxu0 %v2409_v0  ;;  %2156 = vmatprep.subr.bf16.mxu1 %v2409_v0  ;;  %v2282_v0 = vld [vmem:[#allocation3 + $0x1b0] ss:$8 sps:$4 sm:$0xff]  }
  0x5c   :  { %720 = vmatpush2.bf16.msra.mxu0 %v2198_v18  ;;  %2172 = vmatpush2.bf16.msra.mxu1 %v2198_v18 }
  0x5f   :  { %722 = vmatmul.mubr.bf16.vlgmr.msra.gmra.mxu0 %v2199_v19  ;;  %850 = vmatmul.mubr.bf16.vlgmr.msra.gmra.mxu1 %v2223_v20 }
  0x60   :  { %729 = vmatprep.mubr.bf16.mxu0 %v2202_v21  ;;  %857 = vmatprep.mubr.bf16.mxu1 %v2229_v22 }
  0x67   :  { %730 = vmatmul.mubr.bf16.gmra.mxu0 %v2204_v23  ;;  %858 = vmatmul.mubr.bf16.gmra.mxu1 %v2231_v24 }
  0x68   :  { %737 = vmatprep.mubr.bf16.mxu0 %v2205_v25  ;;  %865 = vmatprep.mubr.bf16.mxu1 %v2235_v26 }
  0x6f   :  { %738 = vmatmul.mubr.bf16.gmra.mxu0 %v2207_v27  ;;  %866 = vmatmul.mubr.bf16.gmra.mxu1 %v2237_v28 }
  0x70   :  { %745 = vmatprep.mubr.bf16.mxu0 %v2208_v29  ;;  %873 = vmatprep.mubr.bf16.mxu1 %v2241_v30 }
  0x77   :  { %746 = vmatmul.mubr.bf16.gmra.mxu0 %v2210_v31  ;;  %874 = vmatmul.mubr.bf16.gmra.mxu1 %v2243_v32 }
  0x78   :  { %753 = vmatprep.mubr.bf16.mxu0 %v2211_v33  ;;  %881 = vmatprep.mubr.bf16.mxu1 %v2247_v34 }
  0x7f   :  { %754 = vmatmul.mubr.bf16.gmra.mxu0 %v2213_v35  ;;  %882 = vmatmul.mubr.bf16.gmra.mxu1 %v2249_v36 }
  0x80   :  { %761 = vmatprep.mubr.bf16.mxu0 %v2214_v37  ;;  %889 = vmatprep.mubr.bf16.mxu1 %v2253_v38 }
  0x87   :  { %762 = vmatmul.mubr.bf16.gmra.mxu0 %v2216_v39  ;;  %890 = vmatmul.mubr.bf16.gmra.mxu1 %v2255_v40 }
  0x88   :  { %769 = vmatprep.mubr.bf16.mxu0 %v2217_v41  ;;  %897 = vmatprep.mubr.bf16.mxu1 %v2259_v42 }
  0x8f   :  { %770 = vmatmul.mubr.bf16.gmra.mxu0 %v2219_v43  ;;  %898 = vmatmul.mubr.bf16.gmra.mxu1 %v2261_v44 }
  0x90   :  { %777 = vmatprep.mubr.bf16.mxu0 %v2220_v45  ;;  %905 = vmatprep.mubr.bf16.mxu1 %v2265_v46 }
  0x97   :  { %778 = vmatmul.mubr.bf16.gmra.mxu0 %v2222_v47  ;;  %906 = vmatmul.mubr.bf16.gmra.mxu1 %v2267_v48 }
  0x98   :  { %785 = vmatprep.mubr.bf16.mxu0 %v2226_v49  ;;  %913 = vmatprep.mubr.bf16.mxu1 %v2271_v50 }
  0x9f   :  { %786 = vmatmul.mubr.bf16.gmra.mxu0 %v2228_v51  ;;  %914 = vmatmul.mubr.bf16.gmra.mxu1 %v2273_v52 }
  0xa0   :  { %793 = vmatprep.mubr.bf16.mxu0 %v2232_v53  ;;  %921 = vmatprep.mubr.bf16.mxu1 %v2274_v54 }
  0xa7   :  { %794 = vmatmul.mubr.bf16.gmra.mxu0 %v2234_v55  ;;  %922 = vmatmul.mubr.bf16.gmra.mxu1 %v2276_v56 }
  0xa8   :  { %801 = vmatprep.mubr.bf16.mxu0 %v2238_v57  ;;  %929 = vmatprep.mubr.bf16.mxu1 %v2277_v58 }
  0xaf   :  { %802 = vmatmul.mubr.bf16.gmra.mxu0 %v2240_v59  ;;  %930 = vmatmul.mubr.bf16.gmra.mxu1 %v2279_v60 }
  0xb0   :  { %809 = vmatprep.mubr.bf16.mxu0 %v2244_v61  ;;  %937 = vmatprep.mubr.bf16.mxu1 %v2280_v62 }
  0xb7   :  { %810 = vmatmul.mubr.bf16.gmra.mxu0 %v2246_v63  ;;  %938 = vmatmul.mubr.bf16.gmra.mxu1 %v2282_v0 }
  0xb8   :  { %817 = vmatprep.mubr.bf16.mxu0 %v2250_v1  ;;  %945 = vmatprep.mubr.bf16.mxu1 %v2283_v2 }
  0xbf   :  { %818 = vmatmul.mubr.bf16.gmra.mxu0 %v2252_v3  ;;  %946 = vmatmul.mubr.bf16.gmra.mxu1 %v2285_v4 }
  0xc0   :  { %825 = vmatprep.mubr.bf16.mxu0 %v2256_v5  ;;  %953 = vmatprep.mubr.bf16.mxu1 %v2286_v6 }
  0xc7   :  { %826 = vmatmul.mubr.bf16.gmra.mxu0 %v2258_v7  ;;  %954 = vmatmul.mubr.bf16.gmra.mxu1 %v2288_v8 }
  0xc8   :  { %833 = vmatprep.mubr.bf16.mxu0 %v2262_v9  ;;  %961 = vmatprep.mubr.bf16.mxu1 %v2289_v10 }
  0xcf   :  { %834 = vmatmul.mubr.bf16.gmra.mxu0 %v2264_v11  ;;  %962 = vmatmul.mubr.bf16.gmra.mxu1 %v2291_v12 }
  0xd0   :  { %841 = vmatprep.mubr.bf16.mxu0 %v2268_v13  ;;  %969 = vmatprep.mubr.bf16.mxu1 %v2292_v14 }
  0xd7   :  { %842 = vmatmul.mubr.bf16.gmra.mxu0 %v2270_v15  ;;  %970 = vmatmul.mubr.bf16.gmra.mxu1 %v2294_v16 }
 0x11f   :  { %v2479_v17 = vpop.f32.mrf.mxu0  ;;  %v2481_v18 = vpop.f32.mrf.mxu1 }
 0x121   :  { %v725_v19 = vpop.f32.mrf.mxu0  ;;  %v853_v20 = vpop.f32.mrf.mxu1 }
 0x123   :  { %v2483_v21 = vpop.f32.mrf.mxu0  ;;  %v2485_v22 = vpop.f32.mrf.mxu1 }
 0x124   :  { %v1953_v23 = vpack.c.bf16 %v2483_v21, %v2479_v17  ;;  %v2033_v24 = vpack.c.bf16 %v2485_v22, %v2481_v18 }
 0x125   :  { %v728_v25 = vpop.f32.mrf.mxu0  ;;  %v856_v26 = vpop.f32.mrf.mxu1 }
 0x126   :  { %1954 = vst [vmem:[#allocation8] sm:$0xff] %v1953_v23   ;;  %2125 = vst [vmem:[#allocation8 + $0x80] sm:$0xff] %v2033_v24  }
 0x127   :  { %v2491_v27 = vpop.f32.mrf.mxu0  ;;  %v2493_v28 = vpop.f32.mrf.mxu1 }
 0x129   :  { %v733_v29 = vpop.f32.mrf.mxu0  ;;  %v861_v30 = vpop.f32.mrf.mxu1 }
 0x12b   :  { %v2495_v31 = vpop.f32.mrf.mxu0  ;;  %v2497_v32 = vpop.f32.mrf.mxu1 }
 0x12c   :  { %v1958_v33 = vpack.c.bf16 %v2495_v31, %v2491_v27  ;;  %v2038_v34 = vpack.c.bf16 %v2497_v32, %v2493_v28 }
 0x12d   :  { %v736_v35 = vpop.f32.mrf.mxu0  ;;  %v864_v36 = vpop.f32.mrf.mxu1 }
 0x12e   :  { %2110 = vst [vmem:[#allocation8 + $0x8] sm:$0xff] %v1958_v33   ;;  %2126 = vst [vmem:[#allocation8 + $0x88] sm:$0xff] %v2038_v34  }
 0x12f   :  { %v2503_v37 = vpop.f32.mrf.mxu0  ;;  %v2505_v38 = vpop.f32.mrf.mxu1 }
 0x131   :  { %v741_v39 = vpop.f32.mrf.mxu0  ;;  %v869_v40 = vpop.f32.mrf.mxu1 }
 0x133   :  { %v2507_v41 = vpop.f32.mrf.mxu0  ;;  %v2509_v42 = vpop.f32.mrf.mxu1 }
 0x134   :  { %v1963_v43 = vpack.c.bf16 %v2507_v41, %v2503_v37  ;;  %v2043_v44 = vpack.c.bf16 %v2509_v42, %v2505_v38 }
 0x135   :  { %v744_v45 = vpop.f32.mrf.mxu0  ;;  %v872_v46 = vpop.f32.mrf.mxu1 }
 0x136   :  { %2111 = vst [vmem:[#allocation8 + $0x10] sm:$0xff] %v1963_v43   ;;  %2127 = vst [vmem:[#allocation8 + $0x90] sm:$0xff] %v2043_v44   ;;  %v1564_v43 = vmul.f32 %v2483_v21, %v2483_v21  ;;  %v1563_v46 = vmul.f32 %v2479_v17, %v2479_v17 }
 0x137   :  { %v2515_v47 = vpop.f32.mrf.mxu0  ;;  %v2517_v48 = vpop.f32.mrf.mxu1 }
 0x139   :  { %v749_v49 = vpop.f32.mrf.mxu0  ;;  %v877_v50 = vpop.f32.mrf.mxu1 }
 0x13a   :  { %v1565_v49 = vmul.f32 %v2491_v27, %v2491_v27 }
 0x13b   :  { %v2519_v51 = vpop.f32.mrf.mxu0  ;;  %v2521_v52 = vpop.f32.mrf.mxu1 }
 0x13c   :  { %v1968_v53 = vpack.c.bf16 %v2519_v51, %v2515_v47  ;;  %v2048_v54 = vpack.c.bf16 %v2521_v52, %v2517_v48 }
 0x13d   :  { %v752_v55 = vpop.f32.mrf.mxu0  ;;  %v880_v56 = vpop.f32.mrf.mxu1 }
 0x13e   :  { %2112 = vst [vmem:[#allocation8 + $0x18] sm:$0xff] %v1968_v53   ;;  %2128 = vst [vmem:[#allocation8 + $0x98] sm:$0xff] %v2048_v54   ;;  %v1493_v54 = vadd.f32 %v2483_v21, %v2479_v17  ;;  %v1627_v55 = vadd.f32 %v1564_v43, %v1563_v46  ;;  %v1566_v56 = vmul.f32 %v2495_v31, %v2495_v31 }
 0x13f   :  { %v2527_v57 = vpop.f32.mrf.mxu0  ;;  %v2529_v58 = vpop.f32.mrf.mxu1 }
 0x141   :  { %v757_v59 = vpop.f32.mrf.mxu0  ;;  %v885_v60 = vpop.f32.mrf.mxu1 }
 0x143   :  { %v2531_v61 = vpop.f32.mrf.mxu0  ;;  %v2533_v62 = vpop.f32.mrf.mxu1 }
 0x144   :  { %v1973_v63 = vpack.c.bf16 %v2531_v61, %v2527_v57  ;;  %v2053_v0 = vpack.c.bf16 %v2533_v62, %v2529_v58 }
 0x145   :  { %v760_v1 = vpop.f32.mrf.mxu0  ;;  %v888_v2 = vpop.f32.mrf.mxu1 }
 0x146   :  { %2113 = vst [vmem:[#allocation8 + $0x20] sm:$0xff] %v1973_v63   ;;  %2129 = vst [vmem:[#allocation8 + $0xa0] sm:$0xff] %v2053_v0   ;;  %v1494_v63 = vadd.f32 %v1493_v54, %v2491_v27  ;;  %v1628_v0 = vadd.f32 %v1627_v55, %v1565_v49  ;;  %v1567_v1 = vmul.f32 %v2503_v37, %v2503_v37 }
 0x147   :  { %v2539_v3 = vpop.f32.mrf.mxu0  ;;  %v2541_v4 = vpop.f32.mrf.mxu1  ;;  %v1568_v27 = vmul.f32 %v2507_v41, %v2507_v41 }
 0x149   :  { %v765_v5 = vpop.f32.mrf.mxu0  ;;  %v893_v6 = vpop.f32.mrf.mxu1 }
 0x14a   :  { %v1495_v6 = vadd.f32 %v1494_v63, %v2495_v31  ;;  %v1569_v31 = vmul.f32 %v2515_v47, %v2515_v47 }
 0x14b   :  { %v2543_v7 = vpop.f32.mrf.mxu0  ;;  %v2545_v8 = vpop.f32.mrf.mxu1 }
 0x14c   :  { %v1978_v9 = vpack.c.bf16 %v2543_v7, %v2539_v3  ;;  %v2058_v10 = vpack.c.bf16 %v2545_v8, %v2541_v4 }
 0x14d   :  { %v768_v11 = vpop.f32.mrf.mxu0  ;;  %v896_v12 = vpop.f32.mrf.mxu1 }
 0x14e   :  { %2114 = vst [vmem:[#allocation8 + $0x28] sm:$0xff] %v1978_v9   ;;  %2130 = vst [vmem:[#allocation8 + $0xa8] sm:$0xff] %v2058_v10   ;;  %v1629_v9 = vadd.f32 %v1628_v0, %v1566_v56  ;;  %v1496_v12 = vadd.f32 %v1495_v6, %v2503_v37  ;;  %v1574_v6 = vmul.f32 %v2543_v7, %v2543_v7 }
 0x14f   :  { %v2551_v13 = vpop.f32.mrf.mxu0  ;;  %v2553_v14 = vpop.f32.mrf.mxu1 }
 0x151   :  { %v773_v15 = vpop.f32.mrf.mxu0  ;;  %v901_v16 = vpop.f32.mrf.mxu1 }
 0x152   :  { %v1630_v15 = vadd.f32 %v1629_v9, %v1567_v1 }
 0x153   :  { %v2555_v19 = vpop.f32.mrf.mxu0  ;;  %v2557_v20 = vpop.f32.mrf.mxu1 }
 0x154   :  { %v1983_v23 = vpack.c.bf16 %v2555_v19, %v2551_v13  ;;  %v2063_v24 = vpack.c.bf16 %v2557_v20, %v2553_v14 }
 0x155   :  { %v776_v25 = vpop.f32.mrf.mxu0  ;;  %v904_v26 = vpop.f32.mrf.mxu1 }
 0x156   :  { %2115 = vst [vmem:[#allocation8 + $0x30] sm:$0xff] %v1983_v23   ;;  %2131 = vst [vmem:[#allocation8 + $0xb0] sm:$0xff] %v2063_v24   ;;  %v1497_v24 = vadd.f32 %v1496_v12, %v2507_v41  ;;  %v1631_v25 = vadd.f32 %v1630_v15, %v1568_v27  ;;  %v1570_v26 = vmul.f32 %v2519_v51, %v2519_v51 }
 0x157   :  { %v2563_v29 = vpop.f32.mrf.mxu0  ;;  %v2565_v30 = vpop.f32.mrf.mxu1  ;;  %v1575_v27 = vmul.f32 %v2551_v13, %v2551_v13 }
 0x158   :  { %v1498_v37 = vadd.f32 %v1497_v24, %v2515_v47  ;;  %v1572_v47 = vmul.f32 %v2531_v61, %v2531_v61 }
 0x159   :  { %v781_v33 = vpop.f32.mrf.mxu0  ;;  %v909_v34 = vpop.f32.mrf.mxu1 }
 0x15b   :  { %v2567_v35 = vpop.f32.mrf.mxu0  ;;  %v2569_v36 = vpop.f32.mrf.mxu1 }
 0x15c   :  { %v1988_v39 = vpack.c.bf16 %v2567_v35, %v2563_v29  ;;  %v2068_v40 = vpack.c.bf16 %v2569_v36, %v2565_v30 }
 0x15d   :  { %v784_v44 = vpop.f32.mrf.mxu0  ;;  %v912_v45 = vpop.f32.mrf.mxu1 }
 0x15e   :  { %2116 = vst [vmem:[#allocation8 + $0x38] sm:$0xff] %v1988_v39   ;;  %2132 = vst [vmem:[#allocation8 + $0xb8] sm:$0xff] %v2068_v40   ;;  %v1632_v39 = vadd.f32 %v1631_v25, %v1569_v31  ;;  %v1571_v40 = vmul.f32 %v2527_v57, %v2527_v57  ;;  %v1499_v45 = vadd.f32 %v1498_v37, %v2519_v51 }
 0x15f   :  { %v2581_v50 = vpop.f32.mrf.mxu0  ;;  %v2583_v53 = vpop.f32.mrf.mxu1  ;;  %v1573_v51 = vmul.f32 %v2539_v3, %v2539_v3 }
 0x160   :  { %v1633_v49 = vadd.f32 %v1632_v39, %v1570_v26  ;;  %v1500_v56 = vadd.f32 %v1499_v45, %v2527_v57  ;;  %v1578_v45 = vmul.f32 %v2567_v35, %v2567_v35 }
 0x161   :  { %v789_v59 = vpop.f32.mrf.mxu0  ;;  %v917_v60 = vpop.f32.mrf.mxu1 }
 0x162   :  { %v1634_v59 = vadd.f32 %v1633_v49, %v1571_v40  ;;  %v1501_v0 = vadd.f32 %v1500_v56, %v2531_v61 }
 0x163   :  { %v2592_v2 = vpop.f32.mrf.mxu0  ;;  %v2594_v5 = vpop.f32.mrf.mxu1 }
 0x164   :  { %v1993_v17 = vpack.c.bf16 %v2592_v2, %v2581_v50  ;;  %v2073_v21 = vpack.c.bf16 %v2594_v5, %v2583_v53  ;;  %v1635_v1 = vadd.f32 %v1634_v59, %v1572_v47  ;;  %v1502_v57 = vadd.f32 %v1501_v0, %v2539_v3 }
 0x165   :  { %v792_v10 = vpop.f32.mrf.mxu0  ;;  %v920_v11 = vpop.f32.mrf.mxu1  ;;  %v1576_v3 = vmul.f32 %v2555_v19, %v2555_v19  ;;  %v1579_v47 = vmul.f32 %v2581_v50, %v2581_v50  ;;  %v1580_v0 = vmul.f32 %v2592_v2, %v2592_v2 }
 0x166   :  { %2117 = vst [vmem:[#allocation8 + $0x40] sm:$0xff] %v1993_v17   ;;  %2133 = vst [vmem:[#allocation8 + $0xc0] sm:$0xff] %v2073_v21   ;;  %v1636_v9 = vadd.f32 %v1635_v1, %v1573_v51  ;;  %v1503_v12 = vadd.f32 %v1502_v57, %v2543_v7  ;;  %v1577_v7 = vmul.f32 %v2563_v29, %v2563_v29 }
 0x167   :  { %v2606_v16 = vpop.f32.mrf.mxu0  ;;  %v2608_v23 = vpop.f32.mrf.mxu1 }
 0x168   :  { %v1637_v31 = vadd.f32 %v1636_v9, %v1574_v6  ;;  %v1504_v26 = vadd.f32 %v1503_v12, %v2551_v13 }
 0x169   :  { %v797_v33 = vpop.f32.mrf.mxu0  ;;  %v925_v34 = vpop.f32.mrf.mxu1 }
 0x16a   :  { %v1638_v33 = vadd.f32 %v1637_v31, %v1575_v27  ;;  %v1505_v39 = vadd.f32 %v1504_v26, %v2555_v19 }
 0x16b   :  { %v2616_v43 = vpop.f32.mrf.mxu0  ;;  %v2618_v44 = vpop.f32.mrf.mxu1 }
 0x16c   :  { %v1998_v41 = vpack.c.bf16 %v2616_v43, %v2606_v16  ;;  %v2078_v46 = vpack.c.bf16 %v2618_v44, %v2608_v23  ;;  %v1639_v40 = vadd.f32 %v1638_v33, %v1576_v3  ;;  %v1506_v49 = vadd.f32 %v1505_v39, %v2563_v29 }
 0x16d   :  { %v800_v54 = vpop.f32.mrf.mxu0  ;;  %v928_v55 = vpop.f32.mrf.mxu1  ;;  %v1582_v12 = vmul.f32 %v2616_v43, %v2616_v43 }
 0x16e   :  { %2118 = vst [vmem:[#allocation8 + $0x48] sm:$0xff] %v1998_v41   ;;  %2134 = vst [vmem:[#allocation8 + $0xc8] sm:$0xff] %v2078_v46   ;;  %v1640_v13 = vadd.f32 %v1639_v40, %v1577_v7  ;;  %v1507_v56 = vadd.f32 %v1506_v49, %v2567_v35 }
 0x16f   :  { %v2630_v60 = vpop.f32.mrf.mxu0  ;;  %v2632_v63 = vpop.f32.mrf.mxu1 }
 0x170   :  { %v1641_v51 = vadd.f32 %v1640_v13, %v1578_v45  ;;  %v1508_v29 = vadd.f32 %v1507_v56, %v2581_v50  ;;  %v1583_v3 = vmul.f32 %v2630_v60, %v2630_v60 }
 0x171   :  { %v805_v17 = vpop.f32.mrf.mxu0  ;;  %v933_v21 = vpop.f32.mrf.mxu1 }
 0x172   :  { %v1642_v17 = vadd.f32 %v1641_v51, %v1579_v47  ;;  %v1581_v21 = vmul.f32 %v2606_v16, %v2606_v16  ;;  %v1509_v9 = vadd.f32 %v1508_v29, %v2592_v2 }
 0x173   :  { %v2640_v10 = vpop.f32.mrf.mxu0  ;;  %v2642_v11 = vpop.f32.mrf.mxu1 }
 0x174   :  { %v2003_v61 = vpack.c.bf16 %v2640_v10, %v2630_v60  ;;  %v2083_v15 = vpack.c.bf16 %v2642_v11, %v2632_v63  ;;  %v1643_v27 = vadd.f32 %v1642_v17, %v1580_v0  ;;  %v1510_v31 = vadd.f32 %v1509_v9, %v2606_v16 }
 0x175   :  { %v808_v24 = vpop.f32.mrf.mxu0  ;;  %v936_v25 = vpop.f32.mrf.mxu1  ;;  %v1584_v39 = vmul.f32 %v2640_v10, %v2640_v10 }
 0x176   :  { %2119 = vst [vmem:[#allocation8 + $0x50] sm:$0xff] %v2003_v61   ;;  %2135 = vst [vmem:[#allocation8 + $0xd0] sm:$0xff] %v2083_v15   ;;  %v1644_v50 = vadd.f32 %v1643_v27, %v1581_v21  ;;  %v1511_v26 = vadd.f32 %v1510_v31, %v2616_v43 }
 0x177   :  { %v811_v34 = vpop.f32.mrf.mxu0  ;;  %v2654_v37 = vpop.f32.mrf.mxu1 }
 0x178   :  { %v1645_v7 = vadd.f32 %v1644_v50, %v1582_v12  ;;  %v1512_v16 = vadd.f32 %v1511_v26, %v2630_v60 }
 0x179   :  { %v813_v41 = vpop.f32.mrf.mxu0  ;;  %v941_v46 = vpop.f32.mrf.mxu1 }
 0x17a   :  { %v1646_v41 = vadd.f32 %v1645_v7, %v1583_v3  ;;  %v1585_v46 = vmul.f32 %v811_v34, %v811_v34  ;;  %v1513_v43 = vadd.f32 %v1512_v16, %v2640_v10 }
 0x17b   :  { %v814_v54 = vpop.f32.mrf.mxu0  ;;  %v2662_v55 = vpop.f32.mrf.mxu1 }
 0x17c   :  { %v2008_v59 = vpack.c.bf16 %v814_v54, %v811_v34  ;;  %v2088_v19 = vpack.c.bf16 %v2662_v55, %v2654_v37  ;;  %v1647_v47 = vadd.f32 %v1646_v41, %v1584_v39  ;;  %v1586_v56 = vmul.f32 %v814_v54, %v814_v54 }
 0x17d   :  { %v816_v1 = vpop.f32.mrf.mxu0  ;;  %v944_v6 = vpop.f32.mrf.mxu1  ;;  %v1514_v51 = vadd.f32 %v1513_v43, %v811_v34 }
 0x17e   :  { %2120 = vst [vmem:[#allocation8 + $0x58] sm:$0xff] %v2008_v59   ;;  %2136 = vst [vmem:[#allocation8 + $0xd8] sm:$0xff] %v2088_v19   ;;  %v1648_v0 = vadd.f32 %v1647_v47, %v1585_v46 }
 0x17f   :  { %v819_v57 = vpop.f32.mrf.mxu0  ;;  %v2672_v35 = vpop.f32.mrf.mxu1  ;;  %v1515_v60 = vadd.f32 %v1514_v51, %v814_v54 }
 0x180   :  { %v1587_v1 = vmul.f32 %v819_v57, %v819_v57  ;;  %v1649_v9 = vadd.f32 %v1648_v0, %v1586_v56 }
 0x181   :  { %v821_v61 = vpop.f32.mrf.mxu0  ;;  %v949_v15 = vpop.f32.mrf.mxu1  ;;  %v1516_v10 = vadd.f32 %v1515_v60, %v819_v57 }
 0x182   :  { %v1650_v15 = vadd.f32 %v1649_v9, %v1587_v1 }
 0x183   :  { %v822_v24 = vpop.f32.mrf.mxu0  ;;  %v2680_v25 = vpop.f32.mrf.mxu1 }
 0x184   :  { %v2013_v33 = vpack.c.bf16 %v822_v24, %v819_v57  ;;  %v2093_v2 = vpack.c.bf16 %v2680_v25, %v2672_v35  ;;  %v1588_v27 = vmul.f32 %v822_v24, %v822_v24  ;;  %v1517_v3 = vadd.f32 %v1516_v10, %v822_v24 }
 0x185   :  { %v824_v40 = vpop.f32.mrf.mxu0  ;;  %v952_v45 = vpop.f32.mrf.mxu1 }
 0x186   :  { %2121 = vst [vmem:[#allocation8 + $0x60] sm:$0xff] %v2013_v33   ;;  %2137 = vst [vmem:[#allocation8 + $0xe0] sm:$0xff] %v2093_v2   ;;  %v1651_v26 = vadd.f32 %v1650_v15, %v1588_v27 }
 0x187   :  { %v827_v49 = vpop.f32.mrf.mxu0  ;;  %v2688_v13 = vpop.f32.mrf.mxu1 }
 0x188   :  { %v1589_v31 = vmul.f32 %v827_v49, %v827_v49  ;;  %v1518_v7 = vadd.f32 %v1517_v3, %v827_v49 }
 0x189   :  { %v829_v59 = vpop.f32.mrf.mxu0  ;;  %v957_v19 = vpop.f32.mrf.mxu1 }
 0x18a   :  { %v1652_v39 = vadd.f32 %v1651_v26, %v1589_v31  ;;  %v1595_v26 = vmul.f32 %v2481_v18, %v2481_v18 }
 0x18b   :  { %v830_v6 = vpop.f32.mrf.mxu0  ;;  %v2691_v29 = vpop.f32.mrf.mxu1 }
 0x18c   :  { %v2018_v17 = vpack.c.bf16 %v830_v6, %v827_v49  ;;  %v2098_v21 = vpack.c.bf16 %v2691_v29, %v2688_v13  ;;  %v1590_v33 = vmul.f32 %v830_v6, %v830_v6  ;;  %v1519_v41 = vadd.f32 %v1518_v7, %v830_v6 }
 0x18d   :  { %v832_v12 = vpop.f32.mrf.mxu0  ;;  %v960_v61 = vpop.f32.mrf.mxu1 }
 0x18e   :  { %2122 = vst [vmem:[#allocation8 + $0x68] sm:$0xff] %v2018_v17   ;;  %2138 = vst [vmem:[#allocation8 + $0xe8] sm:$0xff] %v2098_v21   ;;  %v1653_v43 = vadd.f32 %v1652_v39, %v1590_v33 }
 0x18f   :  { %v835_v34 = vpop.f32.mrf.mxu0  ;;  %v2695_v50 = vpop.f32.mrf.mxu1 }
 0x190   :  { %v1591_v40 = vmul.f32 %v835_v34, %v835_v34  ;;  %v1520_v24 = vadd.f32 %v1519_v41, %v835_v34 }
 0x191   :  { %v837_v54 = vpop.f32.mrf.mxu0  ;;  %v965_v2 = vpop.f32.mrf.mxu1 }
 0x192   :  { %v1654_v19 = vadd.f32 %v1653_v43, %v1591_v40 }
 0x193   :  { %v838_v45 = vpop.f32.mrf.mxu0  ;;  %v2697_v16 = vpop.f32.mrf.mxu1 }
 0x194   :  { %v2023_v57 = vpack.c.bf16 %v838_v45, %v835_v34  ;;  %v2103_v46 = vpack.c.bf16 %v2697_v16, %v2695_v50  ;;  %v1592_v47 = vmul.f32 %v838_v45, %v838_v45  ;;  %v1521_v0 = vadd.f32 %v1520_v24, %v838_v45 }
 0x195   :  { %v840_v56 = vpop.f32.mrf.mxu0  ;;  %v968_v59 = vpop.f32.mrf.mxu1 }
 0x196   :  { %2123 = vst [vmem:[#allocation8 + $0x70] sm:$0xff] %v2023_v57   ;;  %2139 = vst [vmem:[#allocation8 + $0xf0] sm:$0xff] %v2103_v46   ;;  %v1655_v60 = vadd.f32 %v1654_v19, %v1592_v47 }
 0x197   :  { %v843_v51 = vpop.f32.mrf.mxu0  ;;  %v2701_v49 = vpop.f32.mrf.mxu1 }
 0x198   :  { %v1593_v1 = vmul.f32 %v843_v51, %v843_v51  ;;  %v1522_v21 = vadd.f32 %v1521_v0, %v843_v51 }
 0x199   :  { %v845_v17 = vpop.f32.mrf.mxu0  ;;  %v973_v6 = vpop.f32.mrf.mxu1 }
 0x19a   :  { %v1656_v9 = vadd.f32 %v1655_v60, %v1593_v1 }
 0x19b   :  { %v846_v27 = vpop.f32.mrf.mxu0  ;;  %v2703_v12 = vpop.f32.mrf.mxu1 }
 0x19c   :  { %v2028_v61 = vpack.c.bf16 %v846_v27, %v843_v51  ;;  %v1523_v10 = vadd.f32 %v1522_v21, %v846_v27  ;;  %v1594_v15 = vmul.f32 %v846_v27, %v846_v27  ;;  %v2108_v31 = vpack.c.bf16 %v2703_v12, %v2701_v49 }
 0x19d   :  { %v848_v34 = vpop.f32.mrf.mxu0  ;;  %v976_v3 = vpop.f32.mrf.mxu1 }
 0x19e   :  { %2124 = vst [vmem:[#allocation8 + $0x78] sm:$0xff] %v2028_v61   ;;  %v1524_v33 = vadd.f32 %v1523_v10, %v2481_v18  ;;  %v1657_v54 = vadd.f32 %v1656_v9, %v1594_v15  ;;  %2140 = vst [vmem:[#allocation8 + $0xf8] sm:$0xff] %v2108_v31  }
 0x19f   :  { %2346 = shalt.err (!%p2343_p0)
}
 0x1a0   :  { %1708 = dma.vmem_to_hbm [thread:$0]  %s1703_s1, 4096, %s2817_s2, [#allocation5], %s2407_s25, %s2407_s25, %s2408_s26   ;;  %v1596_v2 = vmul.f32 %v2485_v22, %v2485_v22  ;;  %v1525_v18 = vadd.f32 %v1524_v33, %v2485_v22  ;;  %v1658_v7 = vadd.f32 %v1657_v54, %v1595_v26  ;;  %v1597_v39 = vmul.f32 %v2493_v28, %v2493_v28 }
 0x1a1   :  { %v1598_v41 = vmul.f32 %v2497_v32, %v2497_v32  ;;  %v1599_v43 = vmul.f32 %v2505_v38, %v2505_v38  ;;  %v1600_v22 = vmul.f32 %v2509_v42, %v2509_v42  ;;  %s2411_s2 = smov [#allocation9]   ;;  %s2412_s7 = smov [#allocation11]  }
 0x1a2   :  { %v1526_v40 = vadd.f32 %v1525_v18, %v2493_v28  ;;  %v1659_v45 = vadd.f32 %v1658_v7, %v1596_v2  ;;  %v1601_v28 = vmul.f32 %v2517_v48, %v2517_v48  ;;  %s1715_s6 = sshll.u32 %s2411_s2, 4  ;;  %s1725_s8 = sshll.u32 %s2412_s7, 4  ;;  %s1716_s6 = int_to_ptr.vmem [resolvable:$true] %s1715_s6  ;;  %s1726_s8 = int_to_ptr.vmem [resolvable:$true] %s1725_s8 }
 0x1a3   :  { %s2355_s9 = scalar_lea.vmem %s1716_s6, 16  ;;  %s2359_s10 = scalar_lea.vmem %s1716_s6, 32 }
 0x1a4   :  { %v1527_v57 = vadd.f32 %v1526_v40, %v2497_v32  ;;  %v1660_v46 = vadd.f32 %v1659_v45, %v1597_v39  ;;  %v1602_v32 = vmul.f32 %v2521_v52, %v2521_v52  ;;  %v1612_v39 = vmul.f32 %v2594_v5, %v2594_v5  ;;  %p2356_p1 = scmp.ne.s32.totalorder %s1716_s6, %s2355_s9  ;;  %p2360_p2 = scmp.lt.s32.totalorder %s1716_s6, %s1716_s6 }
 0x1a5   :  { %p2361_p3 = scmp.lt.s32.totalorder %s2359_s10, %s2355_s9 }
 0x1a6   :  { %v1528_v47 = vadd.f32 %v1527_v57, %v2505_v38  ;;  %v1661_v56 = vadd.f32 %v1660_v46, %v1598_v41  ;;  %v1603_v38 = vmul.f32 %v2529_v58, %v2529_v58  ;;  %v1613_v41 = vmul.f32 %v2608_v23, %v2608_v23 }
 0x1a7   :  { %v1614_v46 = vmul.f32 %v2618_v44, %v2618_v44  ;;  %p2362_p4 = por %p2361_p3, %p2360_p2 }
 0x1a8   :  { %v1529_v59 = vadd.f32 %v1528_v47, %v2509_v42  ;;  %v1662_v24 = vadd.f32 %v1661_v56, %v1599_v43  ;;  %v1604_v42 = vmul.f32 %v2533_v62, %v2533_v62  ;;  %v1615_v47 = vmul.f32 %v2632_v63, %v2632_v63 }
 0x1a9   :  { %p2363_p5 = pnand %p2362_p4, %p2356_p1 }
 0x1aa   :  { %v1530_v19 = vadd.f32 %v1529_v59, %v2517_v48  ;;  %v1663_v51 = vadd.f32 %v1662_v24, %v1600_v22  ;;  %v1605_v48 = vmul.f32 %v2541_v4, %v2541_v4  ;;  %v1616_v22 = vmul.f32 %v2642_v11, %v2642_v11 }
 0x1ab   :  { %v1617_v24 = vmul.f32 %v2654_v37, %v2654_v37 }
 0x1ac   :  { %v1531_v0 = vadd.f32 %v1530_v19, %v2521_v52  ;;  %v1664_v1 = vadd.f32 %v1663_v51, %v1601_v28  ;;  %v1606_v52 = vmul.f32 %v2545_v8, %v2545_v8  ;;  %v1618_v19 = vmul.f32 %v2662_v55, %v2662_v55 }
 0x1ae   :  { %v1665_v60 = vadd.f32 %v1664_v1, %v1602_v32  ;;  %v1532_v17 = vadd.f32 %v1531_v0, %v2529_v58  ;;  %v1607_v58 = vmul.f32 %v2553_v14, %v2553_v14  ;;  %v1619_v32 = vmul.f32 %v2672_v35, %v2672_v35 }
 0x1af   :  { %v1620_v1 = vmul.f32 %v2680_v25, %v2680_v25 }
 0x1b0   :  { %v1533_v6 = vadd.f32 %v1532_v17, %v2533_v62  ;;  %v1666_v21 = vadd.f32 %v1665_v60, %v1603_v38  ;;  %v1608_v62 = vmul.f32 %v2557_v20, %v2557_v20  ;;  %v1621_v60 = vmul.f32 %v2688_v13, %v2688_v13 }
 0x1b2   :  { %v1534_v9 = vadd.f32 %v1533_v6, %v2541_v4  ;;  %v1667_v27 = vadd.f32 %v1666_v21, %v1604_v42  ;;  %v1609_v4 = vmul.f32 %v2565_v30, %v2565_v30  ;;  %v1622_v42 = vmul.f32 %v2691_v29, %v2691_v29 }
 0x1b3   :  { %v1623_v21 = vmul.f32 %v2695_v50, %v2695_v50 }
 0x1b4   :  { %v1535_v61 = vadd.f32 %v1534_v9, %v2545_v8  ;;  %v1668_v10 = vadd.f32 %v1667_v27, %v1605_v48  ;;  %v1610_v8 = vmul.f32 %v2569_v36, %v2569_v36  ;;  %v1624_v9 = vmul.f32 %v2697_v16, %v2697_v16 }
 0x1b6   :  { %v1536_v15 = vadd.f32 %v1535_v61, %v2553_v14  ;;  %v1669_v31 = vadd.f32 %v1668_v10, %v1606_v52  ;;  %v1611_v14 = vmul.f32 %v2583_v53, %v2583_v53  ;;  %v1625_v52 = vmul.f32 %v2701_v49, %v2701_v49 }
 0x1b7   :  { %v1626_v10 = vmul.f32 %v2703_v12, %v2703_v12 }
 0x1b8   :  { %v1537_v34 = vadd.f32 %v1536_v15, %v2557_v20  ;;  %v1670_v3 = vadd.f32 %v1669_v31, %v1607_v58 }
 0x1ba   :  { %v1538_v26 = vadd.f32 %v1537_v34, %v2565_v30  ;;  %v1671_v33 = vadd.f32 %v1670_v3, %v1608_v62 }
 0x1bc   :  { %v1539_v54 = vadd.f32 %v1538_v26, %v2569_v36  ;;  %v1672_v2 = vadd.f32 %v1671_v33, %v1609_v4 }
 0x1be   :  { %v1540_v18 = vadd.f32 %v1539_v54, %v2583_v53  ;;  %v1673_v7 = vadd.f32 %v1672_v2, %v1610_v8 }
 0x1c0   :  { %v1541_v20 = vadd.f32 %v1540_v18, %v2594_v5  ;;  %v1674_v40 = vadd.f32 %v1673_v7, %v1611_v14 }
 0x1c2   :  { %v1675_v30 = vadd.f32 %v1674_v40, %v1612_v39  ;;  %v1542_v45 = vadd.f32 %v1541_v20, %v2608_v23 }
 0x1c4   :  { %v1676_v36 = vadd.f32 %v1675_v30, %v1613_v41  ;;  %v1543_v57 = vadd.f32 %v1542_v45, %v2618_v44 }
 0x1c6   :  { %v1677_v53 = vadd.f32 %v1676_v36, %v1614_v46  ;;  %v1544_v43 = vadd.f32 %v1543_v57, %v2632_v63 }
 0x1c8   :  { %v1678_v5 = vadd.f32 %v1677_v53, %v1615_v47  ;;  %v1545_v56 = vadd.f32 %v1544_v43, %v2642_v11 }
 0x1ca   :  { %v1679_v59 = vadd.f32 %v1678_v5, %v1616_v22  ;;  %v1546_v23 = vadd.f32 %v1545_v56, %v2654_v37 }
 0x1cc   :  { %v1680_v28 = vadd.f32 %v1679_v59, %v1617_v24  ;;  %v1547_v44 = vadd.f32 %v1546_v23, %v2662_v55 }
 0x1ce   :  { %v1681_v51 = vadd.f32 %v1680_v28, %v1618_v19  ;;  %v1548_v63 = vadd.f32 %v1547_v44, %v2672_v35 }
 0x1d0   :  { %v1682_v0 = vadd.f32 %v1681_v51, %v1619_v32  ;;  %v1549_v11 = vadd.f32 %v1548_v63, %v2680_v25 }
 0x1d2   :  { %v1683_v38 = vadd.f32 %v1682_v0, %v1620_v1  ;;  %v1550_v37 = vadd.f32 %v1549_v11, %v2688_v13 }
 0x1d4   :  { %v1684_v17 = vadd.f32 %v1683_v38, %v1621_v60  ;;  %v1551_v55 = vadd.f32 %v1550_v37, %v2691_v29 }
 0x1d6   :  { %v1685_v6 = vadd.f32 %v1684_v17, %v1622_v42  ;;  %v1552_v35 = vadd.f32 %v1551_v55, %v2695_v50 }
 0x1d8   :  { %v1686_v48 = vadd.f32 %v1685_v6, %v1623_v21  ;;  %v1553_v25 = vadd.f32 %v1552_v35, %v2697_v16 }
 0x1da   :  { %v1687_v27 = vadd.f32 %v1686_v48, %v1624_v9  ;;  %v1554_v13 = vadd.f32 %v1553_v25, %v2701_v49 }
 0x1dc   :  { %v1688_v61 = vadd.f32 %v1687_v27, %v1625_v52  ;;  %v1555_v29 = vadd.f32 %v1554_v13, %v2703_v12 }
 0x1de   :  { %v1556_v58 = vrot.slane %v1555_v29, 4  ;;  %v1689_v50 = vadd.f32 %v1688_v61, %v1626_v10 }
 0x1e0   :  { %v1557_v15 = vadd.f32 %v1556_v58, %v1555_v29  ;;  %v1690_v31 = vrot.slane %v1689_v50, 4 }
 0x1e2   :  { %v1558_v62 = vrot.slane %v1557_v15, 2  ;;  %v1691_v34 = vadd.f32 %v1690_v31, %v1689_v50 }
 0x1e4   :  { %v1559_v3 = vadd.f32 %v1558_v62, %v1557_v15  ;;  %v1692_v16 = vrot.slane %v1691_v34, 2 }
 0x1e6   :  { %v1560_v4 = vrot.slane %v1559_v3, 1  ;;  %v1693_v26 = vadd.f32 %v1692_v16, %v1691_v34 }
 0x1e8   :  { %v1561_v49 = vadd.f32 %v1560_v4, %v1559_v3  ;;  %v1694_v33 = vrot.slane %v1693_v26, 1 }
 0x1ea   :  { %1562 = vst [vmem:[#allocation9] sm:$0x1] %v1561_v49  ;;  %v1695_v8 = vadd.f32 %v1694_v33, %v1693_v26 }
 0x1eb   :  { %2366 = shalt.err (!%p2363_p5)
}
 0x1ec   :  { %1718 = dma.vmem_to_hbm [thread:$0]  %s1716_s6, 16, %s2818_s3, [#allocation10]   ;;  %1696 = vst [vmem:[#allocation11] sm:$0x1] %v1695_v8 }
 0x1ed   :  { %s2375_s13 = scalar_lea.vmem %s1726_s8, 16  ;;  %s2379_s14 = scalar_lea.vmem %s1726_s8, 32 }
 0x1ee   :  { %p2376_p6 = scmp.ne.s32.totalorder %s1726_s8, %s2375_s13  ;;  %p2380_p7 = scmp.lt.s32.totalorder %s1726_s8, %s1726_s8 }
 0x1ef   :  { %p2381_p8 = scmp.lt.s32.totalorder %s2379_s14, %s2375_s13 }
 0x1f1   :  { %p2382_p9 = por %p2381_p8, %p2380_p7 }
 0x1f3   :  { %p2383_p10 = pnand %p2382_p9, %p2376_p6 }
 0x1f5   :  { %2386 = shalt.err (!%p2383_p10)
}
 0x1f6   :  { %1728 = dma.vmem_to_hbm [thread:$0]  %s1726_s8, 16, %s2819_s4, [#allocation10]  }
 0x1f7   :  { %2399 = dma.done.wait [#allocation5], 4096  }
 0x1f8   :  { %2400 = vsyncadd [#allocation5], 4294963200 }
 0x1f9   :  { %2401 = dma.done.wait [#allocation10], 32  }
 0x1fa   :  { %2402 = vsyncadd [#allocation10], 4294967264 }
 0x1fb   :  { %1738 = vsyncpa [#allocation4], 1 }
 0x1fc   :  { %1739 = vsyncpa [#allocation7], 1 }
 0x1fd   :  { %1740 = vsyncpa [#allocation5], 1 }
 0x1fe   :  { %1741 = vsyncpa [#allocation10], 1 }

</bundles_post_ra>
